<compile_context>
chip_gen: v5e
topology: v5e:2x2
jax: 0.10.0
libtpu: 0.0.40
codegen_flags: <defaults>
</compile_context>

<pallas_src>
import functools

import jax
import jax.numpy as jnp
from jax.experimental import pallas as pl
from jax.experimental.pallas import tpu as pltpu

SLAB_W = 128  # lane width of the packed parameter slab


# --------------------------------------------------------------------- slab layout
def _param_layout(H, F, L, M):
    """Row layout of the packed (rows, 128) parameter slab. Pure static Python ints."""
    assert 3 * H <= SLAB_W and F <= SLAB_W and M <= SLAB_W
    layout = {}
    row = [0]

    def add(name, r, c):
        layout[name] = (row[0], r, c)
        row[0] += r

    add("emb_ln", 2, H)                      # [gamma; beta]
    for l in range(L):
        add(f"wqkv{l}", H, 3 * H)            # fused QKV weight (scale folded into Q)
        add(f"bqkv{l}", 1, 3 * H)
        add(f"wo{l}",   H, H)
        add(f"bo{l}",   1, H)
        add(f"ln1_{l}", 2, H)
        add(f"w1_{l}",  H, F)
        add(f"b1_{l}",  1, F)
        add(f"w2_{l}",  F, H)
        add(f"b2_{l}",  1, H)
        add(f"ln2_{l}", 2, H)
    # regressor: H -> 256 -> 128 -> M ; the 256-wide hidden is split into two 128 halves
    add("rw1", 2 * H, 128)   # rows 0:H = r_w1[:, :128], rows H:2H = r_w1[:, 128:]
    add("rb1", 2, 128)       # row 0 = r_b1[:128], row 1 = r_b1[128:]
    add("rw2", 256, 128)
    add("rb2", 1, 128)
    add("rw3", 128, M)
    add("rb3", 1, M)
    return layout, row[0]


# --------------------------------------------------------------------------- kernel
def _fused_forward_kernel(
    ids_ref,      # SMEM (B, S) int32  token ids
    amask_ref,    # VMEM (B, S) int32  attention mask (1 = attend)
    emb_ref,      # VMEM (vocab + max_seq + 2, H) f32  [word ; pos ; type] tables
    slab_ref,     # VMEM (rows, 128) f32  packed parameters
    o_ref,        # VMEM (B, M) f32 output
    x_sc,         # VMEM scratch (B*S, H) f32
    *, B, S, heads, num_layers, vocab, max_seq, layout, eps,
):
    H = emb_ref.shape[1]
    BS = B * S
    D = H // heads

    def get(name):
        r0, nr, nc = layout[name]
        return slab_ref[r0:r0 + nr, 0:nc]

    def layer_norm(y, gb):
        mu = jnp.mean(y, axis=-1, keepdims=True)
        var = jnp.mean((y - mu) ** 2, axis=-1, keepdims=True)
        return (y - mu) * jax.lax.rsqrt(var + eps) * gb[0:1, :] + gb[1:2, :]

    # ---- fused embedding lookup: word[id] + pos[s] + type[0], rows built in scratch ----
    type_row = emb_ref[vocab + max_seq:vocab + max_seq + 1, :]
    for b in range(B):                              # static unroll (B*S = 16 rows)
        for s in range(S):
            tok = ids_ref[b, s]                     # SMEM scalar
            row = (emb_ref[pl.ds(tok, 1), :]        # dynamic word-embedding row
                   + emb_ref[vocab + s:vocab + s + 1, :]
                   + type_row)
            x_sc[b * S + s:b * S + s + 1, :] = row

    x = layer_norm(x_sc[...], get("emb_ln"))        # embedding LayerNorm (fused)

    # ---- additive key-mask bias, broadcast hoisted out of the unrolled loops ----
    bias = jnp.where(amask_ref[...] > 0, 0.0, -1e9)            # (B, S) f32
    bias_full = jnp.broadcast_to(bias[:, None, :], (B, S, S))  # (B, S, S)

    for l in range(num_layers):                     # static unroll (L = 2)
        # fused QKV projection (1/sqrt(D) already folded into the Q weight block)
        qkv = jnp.dot(x, get(f"wqkv{l}"),
                      preferred_element_type=jnp.float32) + get(f"bqkv{l}")

        # per-head attention; head contexts concatenated, ONE output-proj matmul
        ctx_heads = []
        for h in range(heads):                      # static unroll (heads = 2)
            q = qkv[:, h * D:(h + 1) * D].reshape(B, S, D)
            k = qkv[:, H + h * D:H + (h + 1) * D].reshape(B, S, D)
            v = qkv[:, 2 * H + h * D:2 * H + (h + 1) * D].reshape(B, S, D)
            sc = jnp.einsum("bqd,bkd->bqk", q, k,
                            preferred_element_type=jnp.float32) + bias_full
            sc = sc - jnp.max(sc, axis=-1, keepdims=True)
            p = jnp.exp(sc)
            p = p * pl.reciprocal(jnp.sum(p, axis=-1, keepdims=True), approx=True)
            ctx = jnp.einsum("bqk,bkd->bqd", p, v,
                             preferred_element_type=jnp.float32)       # (B, S, D)
            ctx_heads.append(ctx.reshape(BS, D))
        ctx_full = jnp.concatenate(ctx_heads, axis=-1)                 # (BS, H)
        attn = jnp.dot(ctx_full, get(f"wo{l}"),
                       preferred_element_type=jnp.float32) + get(f"bo{l}")

        x = layer_norm(x + attn, get(f"ln1_{l}"))

        # FFN: GELU(x W1 + b1) W2 + b2, residual + LayerNorm
        f = jnp.dot(x, get(f"w1_{l}"), preferred_element_type=jnp.float32) + get(f"b1_{l}")
        # TODO(synk): HF BERT uses exact erf GELU; tanh approximation kept (EUP-friendly).
        f = jax.nn.gelu(f)
        f = jnp.dot(f, get(f"w2_{l}"), preferred_element_type=jnp.float32) + get(f"b2_{l}")
        x = layer_norm(x + f, get(f"ln2_{l}"))

    # ---- CLS token (last_hidden_state[:, 0, :]) ----
    cls = x.reshape(B, S, H)[:, 0:1, :].reshape(B, H)

    # ---- regressor MLP (Dropout = identity at inference), 256-hidden split in two halves ----
    rw1 = get("rw1")                                # (2H, 128)
    rb1 = get("rb1")                                # (2, 128)
    h1a = jnp.maximum(jnp.dot(cls, rw1[0:H], preferred_element_type=jnp.float32)
                      + rb1[0:1], 0.0)
    h1b = jnp.maximum(jnp.dot(cls, rw1[H:2 * H], preferred_element_type=jnp.float32)
                      + rb1[1:2], 0.0)
    rw2 = get("rw2")                                # (256, 128)
    h2 = (jnp.dot(h1a, rw2[0:128], preferred_element_type=jnp.float32)
          + jnp.dot(h1b, rw2[128:256], preferred_element_type=jnp.float32)
          + get("rb2"))
    h2 = jnp.maximum(h2, 0.0)
    out = jnp.dot(h2, get("rw3"), preferred_element_type=jnp.float32) + get("rb3")
    o_ref[...] = out.astype(o_ref.dtype)


# --------------------------------------------------------------------------- params
def init_params(key, *, vocab, max_seq, hidden, heads, ffn, layers, num_models):
    assert hidden % heads == 0

    def nrm(k, shape, scale=0.02):
        return (scale * jax.random.normal(k, shape)).astype(jnp.float32)

    keys = iter(jax.random.split(key, 16))
    H, F, L = hidden, ffn, layers
    ln_pair = jnp.stack([jnp.ones((H,), jnp.float32), jnp.zeros((H,), jnp.float32)])  # (2,H)

    return {
        "word_emb": nrm(next(keys), (vocab, H)),
        "pos_emb":  nrm(next(keys), (max_seq, H)),
        "type_emb": nrm(next(keys), (2, H)),
        "emb_ln":   ln_pair,
        "wqkv": nrm(next(keys), (L, H, 3 * H)),
        "bqkv": jnp.zeros((L, 1, 3 * H), jnp.float32),
        "wo":   nrm(next(keys), (L, H, H)),
        "bo":   jnp.zeros((L, 1, H), jnp.float32),
        "ln1":  jnp.tile(ln_pair[None], (L, 1, 1)),
        "w1":   nrm(next(keys), (L, H, F)),
        "b1":   jnp.zeros((L, 1, F), jnp.float32),
        "w2":   nrm(next(keys), (L, F, H)),
        "b2":   jnp.zeros((L, 1, H), jnp.float32),
        "ln2":  jnp.tile(ln_pair[None], (L, 1, 1)),
        "r_w1": nrm(next(keys), (H, 256)),   "r_b1": jnp.zeros((1, 256), jnp.float32),
        "r_w2": nrm(next(keys), (256, 128)), "r_b2": jnp.zeros((1, 128), jnp.float32),
        "r_w3": nrm(next(keys), (128, num_models)),
        "r_b3": jnp.zeros((1, num_models), jnp.float32),
    }


def pack_params(params, cfg):
    """Pack all parameters into (emb_slab, param_slab); done once at init time."""
    H, F, L, M = cfg["hidden"], cfg["ffn"], cfg["layers"], cfg["num_models"]
    layout, nrows = _param_layout(H, F, L, M)
    slab = jnp.zeros((nrows, SLAB_W), jnp.float32)

    def put(s, name, arr):
        r0, nr, nc = layout[name]
        return s.at[r0:r0 + nr, 0:nc].set(jnp.asarray(arr, jnp.float32).reshape(nr, nc))

    slab = put(slab, "emb_ln", params["emb_ln"])
    scale = 1.0 / float(H // cfg["heads"]) ** 0.5
    for l in range(L):
        wqkv = params["wqkv"][l].at[:, :H].multiply(scale)   # fold 1/sqrt(D) into Q
        bqkv = params["bqkv"][l].at[:, :H].multiply(scale)
        slab = put(slab, f"wqkv{l}", wqkv)
        slab = put(slab, f"bqkv{l}", bqkv)
        slab = put(slab, f"wo{l}",   params["wo"][l])
        slab = put(slab, f"bo{l}",   params["bo"][l])
        slab = put(slab, f"ln1_{l}", params["ln1"][l])
        slab = put(slab, f"w1_{l}",  params["w1"][l])
        slab = put(slab, f"b1_{l}",  params["b1"][l])
        slab = put(slab, f"w2_{l}",  params["w2"][l])
        slab = put(slab, f"b2_{l}",  params["b2"][l])
        slab = put(slab, f"ln2_{l}", params["ln2"][l])
    rw1 = params["r_w1"]                                      # (H, 256)
    slab = put(slab, "rw1", jnp.concatenate([rw1[:, :128], rw1[:, 128:]], axis=0))
    slab = put(slab, "rb1", params["r_b1"].reshape(2, 128))
    slab = put(slab, "rw2", params["r_w2"])
    slab = put(slab, "rb2", params["r_b2"])
    slab = put(slab, "rw3", params["r_w3"])
    slab = put(slab, "rb3", params["r_b3"])

    emb_slab = jnp.concatenate(
        [params["word_emb"], params["pos_emb"], params["type_emb"]], axis=0
    ).astype(jnp.float32)                                     # (vocab + max_seq + 2, H)
    return emb_slab, slab


# -------------------------------------------------------------------------- forward
def model_forward(emb_slab, param_slab, input_ids, attention_mask, *, cfg):
    B, S = input_ids.shape
    H, heads, L, M = cfg["hidden"], cfg["heads"], cfg["layers"], cfg["num_models"]
    layout, _ = _param_layout(H, cfg["ffn"], L, M)

    kernel = functools.partial(
        _fused_forward_kernel,
        B=B, S=S, heads=heads, num_layers=L,
        vocab=cfg["vocab"], max_seq=cfg["max_seq"], layout=layout, eps=1e-12)

    return pl.pallas_call(
        kernel,
        out_shape=jax.ShapeDtypeStruct((B, M), jnp.float32),
        in_specs=[
            pl.BlockSpec(memory_space=pltpu.MemorySpace.SMEM),   # input_ids (scalars)
            pl.BlockSpec(memory_space=pltpu.MemorySpace.VMEM),   # attention_mask
            pl.BlockSpec(memory_space=pltpu.MemorySpace.VMEM),   # embedding slab
            pl.BlockSpec(memory_space=pltpu.MemorySpace.VMEM),   # parameter slab
        ],
        scratch_shapes=[pltpu.VMEM((B * S, H), jnp.float32)],
    )(input_ids, attention_mask, emb_slab, param_slab)


# ------------------------------------------------------------------------------ main
if __name__ == "__main__":
    cfg = dict(vocab=64, max_seq=16, hidden=32, heads=2, ffn=64, layers=2, num_models=4)
    B, S = 2, 8

    key = jax.random.PRNGKey(0)
    k_param, k_ids = jax.random.split(key)

    params = init_params(k_param, **cfg)
    emb_slab, param_slab = pack_params(params, cfg)

    input_ids = jax.random.randint(k_ids, (B, S), 0, cfg["vocab"], dtype=jnp.int32)
    attention_mask = jnp.array([[1, 1, 1, 1, 1, 1, 1, 1],
                                [1, 1, 1, 1, 1, 1, 0, 0]], dtype=jnp.int32)

    fwd = jax.jit(functools.partial(model_forward, cfg=cfg))
    out = jax.block_until_ready(fwd(emb_slab, param_slab, input_ids, attention_mask))

    assert out.shape == (B, cfg["num_models"]), out.shape
    assert bool(jnp.all(jnp.isfinite(out)))
    print("KERNEL_OK")
</pallas_src>

<mosaic_0001>
module attributes {stable_mosaic.version = 11 : i64} {
  func.func @_fused_forward_kernel(%arg0: memref<2x8xi32, #tpu.memory_space<smem>>, %arg1: memref<2x8xi32, #tpu.memory_space<vmem>>, %arg2: memref<82x32xf32, #tpu.memory_space<vmem>>, %arg3: memref<790x128xf32, #tpu.memory_space<vmem>>, %arg4: memref<2x4xf32, #tpu.memory_space<vmem>>, %arg5: memref<16x32xf32, #tpu.memory_space<vmem>>) attributes {dimension_semantics = [], scalar_prefetch = 0 : i64, scratch_operands = 1 : i64, tpu.core_type = #tpu.core_type<tc>} {
    %c80 = arith.constant 80 : index
    %c0 = arith.constant 0 : index
    %0 = vector.load %arg2[%c80, %c0] : memref<82x32xf32, #tpu.memory_space<vmem>>, vector<1x32xf32>
    %c0_0 = arith.constant 0 : index
    %c0_1 = arith.constant 0 : index
    %1 = memref.load %arg0[%c0_0, %c0_1] : memref<2x8xi32, #tpu.memory_space<smem>>
    %2 = arith.index_cast %1 : i32 to index
    %c0_2 = arith.constant 0 : index
    %3 = vector.load %arg2[%2, %c0_2] : memref<82x32xf32, #tpu.memory_space<vmem>>, vector<1x32xf32>
    %c64 = arith.constant 64 : index
    %c0_3 = arith.constant 0 : index
    %4 = vector.load %arg2[%c64, %c0_3] : memref<82x32xf32, #tpu.memory_space<vmem>>, vector<1x32xf32>
    %5 = arith.addf %3, %4 : vector<1x32xf32>
    %6 = arith.addf %5, %0 : vector<1x32xf32>
    %c0_4 = arith.constant 0 : index
    %c0_5 = arith.constant 0 : index
    %7 = vector.load %arg5[%c0_4, %c0_5] : memref<16x32xf32, #tpu.memory_space<vmem>>, vector<1x32xf32>
    tpu.vector_store %arg5[%c0_4, %c0_5], %6 {strides = array<i32>} : memref<16x32xf32, #tpu.memory_space<vmem>>, vector<1x32xf32>,
    %c0_6 = arith.constant 0 : index
    %c1 = arith.constant 1 : index
    %8 = memref.load %arg0[%c0_6, %c1] : memref<2x8xi32, #tpu.memory_space<smem>>
    %9 = arith.index_cast %8 : i32 to index
    %c0_7 = arith.constant 0 : index
    %10 = vector.load %arg2[%9, %c0_7] : memref<82x32xf32, #tpu.memory_space<vmem>>, vector<1x32xf32>
    %c65 = arith.constant 65 : index
    %c0_8 = arith.constant 0 : index
    %11 = vector.load %arg2[%c65, %c0_8] : memref<82x32xf32, #tpu.memory_space<vmem>>, vector<1x32xf32>
    %12 = arith.addf %10, %11 : vector<1x32xf32>
    %13 = arith.addf %12, %0 : vector<1x32xf32>
    %c1_9 = arith.constant 1 : index
    %c0_10 = arith.constant 0 : index
    %14 = vector.load %arg5[%c1_9, %c0_10] : memref<16x32xf32, #tpu.memory_space<vmem>>, vector<1x32xf32>
    tpu.vector_store %arg5[%c1_9, %c0_10], %13 {strides = array<i32>} : memref<16x32xf32, #tpu.memory_space<vmem>>, vector<1x32xf32>,
    %c0_11 = arith.constant 0 : index
    %c2 = arith.constant 2 : index
    %15 = memref.load %arg0[%c0_11, %c2] : memref<2x8xi32, #tpu.memory_space<smem>>
    %16 = arith.index_cast %15 : i32 to index
    %c0_12 = arith.constant 0 : index
    %17 = vector.load %arg2[%16, %c0_12] : memref<82x32xf32, #tpu.memory_space<vmem>>, vector<1x32xf32>
    %c66 = arith.constant 66 : index
    %c0_13 = arith.constant 0 : index
    %18 = vector.load %arg2[%c66, %c0_13] : memref<82x32xf32, #tpu.memory_space<vmem>>, vector<1x32xf32>
    %19 = arith.addf %17, %18 : vector<1x32xf32>
    %20 = arith.addf %19, %0 : vector<1x32xf32>
    %c2_14 = arith.constant 2 : index
    %c0_15 = arith.constant 0 : index
    %21 = vector.load %arg5[%c2_14, %c0_15] : memref<16x32xf32, #tpu.memory_space<vmem>>, vector<1x32xf32>
    tpu.vector_store %arg5[%c2_14, %c0_15], %20 {strides = array<i32>} : memref<16x32xf32, #tpu.memory_space<vmem>>, vector<1x32xf32>,
    %c0_16 = arith.constant 0 : index
    %c3 = arith.constant 3 : index
    %22 = memref.load %arg0[%c0_16, %c3] : memref<2x8xi32, #tpu.memory_space<smem>>
    %23 = arith.index_cast %22 : i32 to index
    %c0_17 = arith.constant 0 : index
    %24 = vector.load %arg2[%23, %c0_17] : memref<82x32xf32, #tpu.memory_space<vmem>>, vector<1x32xf32>
    %c67 = arith.constant 67 : index
    %c0_18 = arith.constant 0 : index
    %25 = vector.load %arg2[%c67, %c0_18] : memref<82x32xf32, #tpu.memory_space<vmem>>, vector<1x32xf32>
    %26 = arith.addf %24, %25 : vector<1x32xf32>
    %27 = arith.addf %26, %0 : vector<1x32xf32>
    %c3_19 = arith.constant 3 : index
    %c0_20 = arith.constant 0 : index
    %28 = vector.load %arg5[%c3_19, %c0_20] : memref<16x32xf32, #tpu.memory_space<vmem>>, vector<1x32xf32>
    tpu.vector_store %arg5[%c3_19, %c0_20], %27 {strides = array<i32>} : memref<16x32xf32, #tpu.memory_space<vmem>>, vector<1x32xf32>,
    %c0_21 = arith.constant 0 : index
    %c4 = arith.constant 4 : index
    %29 = memref.load %arg0[%c0_21, %c4] : memref<2x8xi32, #tpu.memory_space<smem>>
    %30 = arith.index_cast %29 : i32 to index
    %c0_22 = arith.constant 0 : index
    %31 = vector.load %arg2[%30, %c0_22] : memref<82x32xf32, #tpu.memory_space<vmem>>, vector<1x32xf32>
    %c68 = arith.constant 68 : index
    %c0_23 = arith.constant 0 : index
    %32 = vector.load %arg2[%c68, %c0_23] : memref<82x32xf32, #tpu.memory_space<vmem>>, vector<1x32xf32>
    %33 = arith.addf %31, %32 : vector<1x32xf32>
    %34 = arith.addf %33, %0 : vector<1x32xf32>
    %c4_24 = arith.constant 4 : index
    %c0_25 = arith.constant 0 : index
    %35 = vector.load %arg5[%c4_24, %c0_25] : memref<16x32xf32, #tpu.memory_space<vmem>>, vector<1x32xf32>
    tpu.vector_store %arg5[%c4_24, %c0_25], %34 {strides = array<i32>} : memref<16x32xf32, #tpu.memory_space<vmem>>, vector<1x32xf32>,
    %c0_26 = arith.constant 0 : index
    %c5 = arith.constant 5 : index
    %36 = memref.load %arg0[%c0_26, %c5] : memref<2x8xi32, #tpu.memory_space<smem>>
    %37 = arith.index_cast %36 : i32 to index
    %c0_27 = arith.constant 0 : index
    %38 = vector.load %arg2[%37, %c0_27] : memref<82x32xf32, #tpu.memory_space<vmem>>, vector<1x32xf32>
    %c69 = arith.constant 69 : index
    %c0_28 = arith.constant 0 : index
    %39 = vector.load %arg2[%c69, %c0_28] : memref<82x32xf32, #tpu.memory_space<vmem>>, vector<1x32xf32>
    %40 = arith.addf %38, %39 : vector<1x32xf32>
    %41 = arith.addf %40, %0 : vector<1x32xf32>
    %c5_29 = arith.constant 5 : index
    %c0_30 = arith.constant 0 : index
    %42 = vector.load %arg5[%c5_29, %c0_30] : memref<16x32xf32, #tpu.memory_space<vmem>>, vector<1x32xf32>
    tpu.vector_store %arg5[%c5_29, %c0_30], %41 {strides = array<i32>} : memref<16x32xf32, #tpu.memory_space<vmem>>, vector<1x32xf32>,
    %c0_31 = arith.constant 0 : index
    %c6 = arith.constant 6 : index
    %43 = memref.load %arg0[%c0_31, %c6] : memref<2x8xi32, #tpu.memory_space<smem>>
    %44 = arith.index_cast %43 : i32 to index
    %c0_32 = arith.constant 0 : index
    %45 = vector.load %arg2[%44, %c0_32] : memref<82x32xf32, #tpu.memory_space<vmem>>, vector<1x32xf32>
    %c70 = arith.constant 70 : index
    %c0_33 = arith.constant 0 : index
    %46 = vector.load %arg2[%c70, %c0_33] : memref<82x32xf32, #tpu.memory_space<vmem>>, vector<1x32xf32>
    %47 = arith.addf %45, %46 : vector<1x32xf32>
    %48 = arith.addf %47, %0 : vector<1x32xf32>
    %c6_34 = arith.constant 6 : index
    %c0_35 = arith.constant 0 : index
    %49 = vector.load %arg5[%c6_34, %c0_35] : memref<16x32xf32, #tpu.memory_space<vmem>>, vector<1x32xf32>
    tpu.vector_store %arg5[%c6_34, %c0_35], %48 {strides = array<i32>} : memref<16x32xf32, #tpu.memory_space<vmem>>, vector<1x32xf32>,
    %c0_36 = arith.constant 0 : index
    %c7 = arith.constant 7 : index
    %50 = memref.load %arg0[%c0_36, %c7] : memref<2x8xi32, #tpu.memory_space<smem>>
    %51 = arith.index_cast %50 : i32 to index
    %c0_37 = arith.constant 0 : index
    %52 = vector.load %arg2[%51, %c0_37] : memref<82x32xf32, #tpu.memory_space<vmem>>, vector<1x32xf32>
    %c71 = arith.constant 71 : index
    %c0_38 = arith.constant 0 : index
    %53 = vector.load %arg2[%c71, %c0_38] : memref<82x32xf32, #tpu.memory_space<vmem>>, vector<1x32xf32>
    %54 = arith.addf %52, %53 : vector<1x32xf32>
    %55 = arith.addf %54, %0 : vector<1x32xf32>
    %c7_39 = arith.constant 7 : index
    %c0_40 = arith.constant 0 : index
    %56 = vector.load %arg5[%c7_39, %c0_40] : memref<16x32xf32, #tpu.memory_space<vmem>>, vector<1x32xf32>
    tpu.vector_store %arg5[%c7_39, %c0_40], %55 {strides = array<i32>} : memref<16x32xf32, #tpu.memory_space<vmem>>, vector<1x32xf32>,
    %c1_41 = arith.constant 1 : index
    %c0_42 = arith.constant 0 : index
    %57 = memref.load %arg0[%c1_41, %c0_42] : memref<2x8xi32, #tpu.memory_space<smem>>
    %58 = arith.index_cast %57 : i32 to index
    %c0_43 = arith.constant 0 : index
    %59 = vector.load %arg2[%58, %c0_43] : memref<82x32xf32, #tpu.memory_space<vmem>>, vector<1x32xf32>
    %c64_44 = arith.constant 64 : index
    %c0_45 = arith.constant 0 : index
    %60 = vector.load %arg2[%c64_44, %c0_45] : memref<82x32xf32, #tpu.memory_space<vmem>>, vector<1x32xf32>
    %61 = arith.addf %59, %60 : vector<1x32xf32>
    %62 = arith.addf %61, %0 : vector<1x32xf32>
    %c8 = arith.constant 8 : index
    %c0_46 = arith.constant 0 : index
    %63 = vector.load %arg5[%c8, %c0_46] : memref<16x32xf32, #tpu.memory_space<vmem>>, vector<1x32xf32>
    tpu.vector_store %arg5[%c8, %c0_46], %62 {strides = array<i32>} : memref<16x32xf32, #tpu.memory_space<vmem>>, vector<1x32xf32>,
    %c1_47 = arith.constant 1 : index
    %c1_48 = arith.constant 1 : index
    %64 = memref.load %arg0[%c1_47, %c1_48] : memref<2x8xi32, #tpu.memory_space<smem>>
    %65 = arith.index_cast %64 : i32 to index
    %c0_49 = arith.constant 0 : index
    %66 = vector.load %arg2[%65, %c0_49] : memref<82x32xf32, #tpu.memory_space<vmem>>, vector<1x32xf32>
    %c65_50 = arith.constant 65 : index
    %c0_51 = arith.constant 0 : index
    %67 = vector.load %arg2[%c65_50, %c0_51] : memref<82x32xf32, #tpu.memory_space<vmem>>, vector<1x32xf32>
    %68 = arith.addf %66, %67 : vector<1x32xf32>
    %69 = arith.addf %68, %0 : vector<1x32xf32>
    %c9 = arith.constant 9 : index
    %c0_52 = arith.constant 0 : index
    %70 = vector.load %arg5[%c9, %c0_52] : memref<16x32xf32, #tpu.memory_space<vmem>>, vector<1x32xf32>
    tpu.vector_store %arg5[%c9, %c0_52], %69 {strides = array<i32>} : memref<16x32xf32, #tpu.memory_space<vmem>>, vector<1x32xf32>,
    %c1_53 = arith.constant 1 : index
    %c2_54 = arith.constant 2 : index
    %71 = memref.load %arg0[%c1_53, %c2_54] : memref<2x8xi32, #tpu.memory_space<smem>>
    %72 = arith.index_cast %71 : i32 to index
    %c0_55 = arith.constant 0 : index
    %73 = vector.load %arg2[%72, %c0_55] : memref<82x32xf32, #tpu.memory_space<vmem>>, vector<1x32xf32>
    %c66_56 = arith.constant 66 : index
    %c0_57 = arith.constant 0 : index
    %74 = vector.load %arg2[%c66_56, %c0_57] : memref<82x32xf32, #tpu.memory_space<vmem>>, vector<1x32xf32>
    %75 = arith.addf %73, %74 : vector<1x32xf32>
    %76 = arith.addf %75, %0 : vector<1x32xf32>
    %c10 = arith.constant 10 : index
    %c0_58 = arith.constant 0 : index
    %77 = vector.load %arg5[%c10, %c0_58] : memref<16x32xf32, #tpu.memory_space<vmem>>, vector<1x32xf32>
    tpu.vector_store %arg5[%c10, %c0_58], %76 {strides = array<i32>} : memref<16x32xf32, #tpu.memory_space<vmem>>, vector<1x32xf32>,
    %c1_59 = arith.constant 1 : index
    %c3_60 = arith.constant 3 : index
    %78 = memref.load %arg0[%c1_59, %c3_60] : memref<2x8xi32, #tpu.memory_space<smem>>
    %79 = arith.index_cast %78 : i32 to index
    %c0_61 = arith.constant 0 : index
    %80 = vector.load %arg2[%79, %c0_61] : memref<82x32xf32, #tpu.memory_space<vmem>>, vector<1x32xf32>
    %c67_62 = arith.constant 67 : index
    %c0_63 = arith.constant 0 : index
    %81 = vector.load %arg2[%c67_62, %c0_63] : memref<82x32xf32, #tpu.memory_space<vmem>>, vector<1x32xf32>
    %82 = arith.addf %80, %81 : vector<1x32xf32>
    %83 = arith.addf %82, %0 : vector<1x32xf32>
    %c11 = arith.constant 11 : index
    %c0_64 = arith.constant 0 : index
    %84 = vector.load %arg5[%c11, %c0_64] : memref<16x32xf32, #tpu.memory_space<vmem>>, vector<1x32xf32>
    tpu.vector_store %arg5[%c11, %c0_64], %83 {strides = array<i32>} : memref<16x32xf32, #tpu.memory_space<vmem>>, vector<1x32xf32>,
    %c1_65 = arith.constant 1 : index
    %c4_66 = arith.constant 4 : index
    %85 = memref.load %arg0[%c1_65, %c4_66] : memref<2x8xi32, #tpu.memory_space<smem>>
    %86 = arith.index_cast %85 : i32 to index
    %c0_67 = arith.constant 0 : index
    %87 = vector.load %arg2[%86, %c0_67] : memref<82x32xf32, #tpu.memory_space<vmem>>, vector<1x32xf32>
    %c68_68 = arith.constant 68 : index
    %c0_69 = arith.constant 0 : index
    %88 = vector.load %arg2[%c68_68, %c0_69] : memref<82x32xf32, #tpu.memory_space<vmem>>, vector<1x32xf32>
    %89 = arith.addf %87, %88 : vector<1x32xf32>
    %90 = arith.addf %89, %0 : vector<1x32xf32>
    %c12 = arith.constant 12 : index
    %c0_70 = arith.constant 0 : index
    %91 = vector.load %arg5[%c12, %c0_70] : memref<16x32xf32, #tpu.memory_space<vmem>>, vector<1x32xf32>
    tpu.vector_store %arg5[%c12, %c0_70], %90 {strides = array<i32>} : memref<16x32xf32, #tpu.memory_space<vmem>>, vector<1x32xf32>,
    %c1_71 = arith.constant 1 : index
    %c5_72 = arith.constant 5 : index
    %92 = memref.load %arg0[%c1_71, %c5_72] : memref<2x8xi32, #tpu.memory_space<smem>>
    %93 = arith.index_cast %92 : i32 to index
    %c0_73 = arith.constant 0 : index
    %94 = vector.load %arg2[%93, %c0_73] : memref<82x32xf32, #tpu.memory_space<vmem>>, vector<1x32xf32>
    %c69_74 = arith.constant 69 : index
    %c0_75 = arith.constant 0 : index
    %95 = vector.load %arg2[%c69_74, %c0_75] : memref<82x32xf32, #tpu.memory_space<vmem>>, vector<1x32xf32>
    %96 = arith.addf %94, %95 : vector<1x32xf32>
    %97 = arith.addf %96, %0 : vector<1x32xf32>
    %c13 = arith.constant 13 : index
    %c0_76 = arith.constant 0 : index
    %98 = vector.load %arg5[%c13, %c0_76] : memref<16x32xf32, #tpu.memory_space<vmem>>, vector<1x32xf32>
    tpu.vector_store %arg5[%c13, %c0_76], %97 {strides = array<i32>} : memref<16x32xf32, #tpu.memory_space<vmem>>, vector<1x32xf32>,
    %c1_77 = arith.constant 1 : index
    %c6_78 = arith.constant 6 : index
    %99 = memref.load %arg0[%c1_77, %c6_78] : memref<2x8xi32, #tpu.memory_space<smem>>
    %100 = arith.index_cast %99 : i32 to index
    %c0_79 = arith.constant 0 : index
    %101 = vector.load %arg2[%100, %c0_79] : memref<82x32xf32, #tpu.memory_space<vmem>>, vector<1x32xf32>
    %c70_80 = arith.constant 70 : index
    %c0_81 = arith.constant 0 : index
    %102 = vector.load %arg2[%c70_80, %c0_81] : memref<82x32xf32, #tpu.memory_space<vmem>>, vector<1x32xf32>
    %103 = arith.addf %101, %102 : vector<1x32xf32>
    %104 = arith.addf %103, %0 : vector<1x32xf32>
    %c14 = arith.constant 14 : index
    %c0_82 = arith.constant 0 : index
    %105 = vector.load %arg5[%c14, %c0_82] : memref<16x32xf32, #tpu.memory_space<vmem>>, vector<1x32xf32>
    tpu.vector_store %arg5[%c14, %c0_82], %104 {strides = array<i32>} : memref<16x32xf32, #tpu.memory_space<vmem>>, vector<1x32xf32>,
    %c1_83 = arith.constant 1 : index
    %c7_84 = arith.constant 7 : index
    %106 = memref.load %arg0[%c1_83, %c7_84] : memref<2x8xi32, #tpu.memory_space<smem>>
    %107 = arith.index_cast %106 : i32 to index
    %c0_85 = arith.constant 0 : index
    %108 = vector.load %arg2[%107, %c0_85] : memref<82x32xf32, #tpu.memory_space<vmem>>, vector<1x32xf32>
    %c71_86 = arith.constant 71 : index
    %c0_87 = arith.constant 0 : index
    %109 = vector.load %arg2[%c71_86, %c0_87] : memref<82x32xf32, #tpu.memory_space<vmem>>, vector<1x32xf32>
    %110 = arith.addf %108, %109 : vector<1x32xf32>
    %111 = arith.addf %110, %0 : vector<1x32xf32>
    %c15 = arith.constant 15 : index
    %c0_88 = arith.constant 0 : index
    %112 = vector.load %arg5[%c15, %c0_88] : memref<16x32xf32, #tpu.memory_space<vmem>>, vector<1x32xf32>
    tpu.vector_store %arg5[%c15, %c0_88], %111 {strides = array<i32>} : memref<16x32xf32, #tpu.memory_space<vmem>>, vector<1x32xf32>,
    %c0_89 = arith.constant 0 : index
    %c0_90 = arith.constant 0 : index
    %113 = vector.load %arg5[%c0_89, %c0_90] : memref<16x32xf32, #tpu.memory_space<vmem>>, vector<16x32xf32>
    %c0_91 = arith.constant 0 : index
    %c0_92 = arith.constant 0 : index
    %114 = vector.load %arg3[%c0_91, %c0_92] : memref<790x128xf32, #tpu.memory_space<vmem>>, vector<2x32xf32>
    %cst = arith.constant dense<0.000000e+00> : vector<16xf32>
    %115 = vector.multi_reduction <add>, %113, %cst [1] : vector<16x32xf32> to vector<16xf32>
    %116 = vector.shape_cast %115 : vector<16xf32> to vector<16x1xf32>
    %cst_93 = arith.constant 3.200000e+01 : f32
    %117 = vector.broadcast %cst_93 : f32 to vector<16x1xf32>
    %118 = arith.divf %116, %117 : vector<16x1xf32>
    %119 = vector.broadcast %118 : vector<16x1xf32> to vector<16x32xf32>
    %120 = arith.subf %113, %119 : vector<16x32xf32>
    %121 = arith.mulf %120, %120 : vector<16x32xf32>
    %cst_94 = arith.constant dense<0.000000e+00> : vector<16xf32>
    %122 = vector.multi_reduction <add>, %121, %cst_94 [1] : vector<16x32xf32> to vector<16xf32>
    %123 = vector.shape_cast %122 : vector<16xf32> to vector<16x1xf32>
    %cst_95 = arith.constant 3.200000e+01 : f32
    %124 = vector.broadcast %cst_95 : f32 to vector<16x1xf32>
    %125 = arith.divf %123, %124 : vector<16x1xf32>
    %126 = vector.broadcast %118 : vector<16x1xf32> to vector<16x32xf32>
    %127 = arith.subf %113, %126 : vector<16x32xf32>
    %cst_96 = arith.constant 9.99999996E-13 : f32
    %128 = vector.broadcast %cst_96 : f32 to vector<16x1xf32>
    %129 = arith.addf %125, %128 : vector<16x1xf32>
    %130 = math.rsqrt %129 : vector<16x1xf32>
    %131 = vector.broadcast %130 : vector<16x1xf32> to vector<16x32xf32>
    %132 = arith.mulf %127, %131 : vector<16x32xf32>
    %133 = vector.extract_strided_slice %114 {offsets = [0, 0], sizes = [1, 32], strides = [1, 1]} : vector<2x32xf32> to vector<1x32xf32>
    %134 = vector.broadcast %133 : vector<1x32xf32> to vector<16x32xf32>
    %135 = arith.mulf %132, %134 : vector<16x32xf32>
    %136 = vector.extract_strided_slice %114 {offsets = [1, 0], sizes = [1, 32], strides = [1, 1]} : vector<2x32xf32> to vector<1x32xf32>
    %137 = vector.broadcast %136 : vector<1x32xf32> to vector<16x32xf32>
    %138 = arith.addf %135, %137 : vector<16x32xf32>
    %c0_97 = arith.constant 0 : index
    %c0_98 = arith.constant 0 : index
    %139 = vector.load %arg1[%c0_97, %c0_98] : memref<2x8xi32, #tpu.memory_space<vmem>>, vector<2x8xi32>
    %c0_i32 = arith.constant 0 : i32
    %140 = vector.broadcast %c0_i32 : i32 to vector<2x8xi32>
    %141 = arith.cmpi sgt, %139, %140 : vector<2x8xi32>
    %cst_99 = arith.constant 0.000000e+00 : f32
    %cst_100 = arith.constant -1.000000e+09 : f32
    %142 = vector.broadcast %cst_99 : f32 to vector<2x8xf32>
    %143 = vector.broadcast %cst_100 : f32 to vector<2x8xf32>
    %144 = arith.select %141, %142, %143 : vector<2x8xi1>, vector<2x8xf32>
    %145 = vector.shape_cast %144 : vector<2x8xf32> to vector<2x1x8xf32>
    %146 = vector.shape_cast %145 : vector<2x1x8xf32> to vector<2x1x8xf32>
    %147 = vector.broadcast %146 : vector<2x1x8xf32> to vector<2x8x8xf32>
    %c2_101 = arith.constant 2 : index
    %c0_102 = arith.constant 0 : index
    %148 = vector.load %arg3[%c2_101, %c0_102] : memref<790x128xf32, #tpu.memory_space<vmem>>, vector<32x96xf32>
    %cst_103 = arith.constant dense<0.000000e+00> : vector<16x96xf32>
    %149 = tpu.matmul %138, %148, %cst_103 {dimension_numbers = #tpu.dot_dimension_numbers<[1], [0], [0], [1], [0, 0, 1, 1], [], []>} : vector<16x32xf32>, vector<32x96xf32>, vector<16x96xf32> -> vector<16x96xf32>
    %c34 = arith.constant 34 : index
    %c0_104 = arith.constant 0 : index
    %150 = vector.load %arg3[%c34, %c0_104] : memref<790x128xf32, #tpu.memory_space<vmem>>, vector<1x96xf32>
    %151 = vector.broadcast %150 : vector<1x96xf32> to vector<16x96xf32>
    %152 = arith.addf %149, %151 : vector<16x96xf32>
    %153 = vector.extract_strided_slice %152 {offsets = [0, 0], sizes = [16, 16], strides = [1, 1]} : vector<16x96xf32> to vector<16x16xf32>
    %154 = vector.shape_cast %153 : vector<16x16xf32> to vector<2x8x16xf32>
    %155 = vector.extract_strided_slice %152 {offsets = [0, 32], sizes = [16, 16], strides = [1, 1]} : vector<16x96xf32> to vector<16x16xf32>
    %156 = vector.shape_cast %155 : vector<16x16xf32> to vector<2x8x16xf32>
    %157 = vector.extract_strided_slice %152 {offsets = [0, 64], sizes = [16, 16], strides = [1, 1]} : vector<16x96xf32> to vector<16x16xf32>
    %158 = vector.shape_cast %157 : vector<16x16xf32> to vector<2x8x16xf32>
    "tpu.trace_start"() <{level = 10 : i32, message = "bqd,bkd->bqk"}> : () -> ()
    %cst_105 = arith.constant dense<0.000000e+00> : vector<2x8x8xf32>
    %159 = tpu.matmul %154, %156, %cst_105 {dimension_numbers = #tpu.dot_dimension_numbers<[2], [2], [1], [1], [0, 0, 0, 1, 1, 1], [0], [0]>} : vector<2x8x16xf32>, vector<2x8x16xf32>, vector<2x8x8xf32> -> vector<2x8x8xf32>
    "tpu.trace_stop"() : () -> ()
    %160 = arith.addf %159, %147 : vector<2x8x8xf32>
    %cst_106 = arith.constant dense<0xFF800000> : vector<2x8xf32>
    %161 = vector.multi_reduction <maximumf>, %160, %cst_106 [2] : vector<2x8x8xf32> to vector<2x8xf32>
    %162 = vector.shape_cast %161 : vector<2x8xf32> to vector<2x8x1xf32>
    %163 = vector.broadcast %162 : vector<2x8x1xf32> to vector<2x8x8xf32>
    %164 = arith.subf %160, %163 : vector<2x8x8xf32>
    %165 = math.exp %164 : vector<2x8x8xf32>
    %cst_107 = arith.constant dense<0.000000e+00> : vector<2x8xf32>
    %166 = vector.multi_reduction <add>, %165, %cst_107 [2] : vector<2x8x8xf32> to vector<2x8xf32>
    %167 = vector.shape_cast %166 : vector<2x8xf32> to vector<2x8x1xf32>
    %168 = tpu.reciprocal %167 {approx = true} : vector<2x8x1xf32> -> vector<2x8x1xf32>
    %169 = vector.broadcast %168 : vector<2x8x1xf32> to vector<2x8x8xf32>
    %170 = arith.mulf %165, %169 : vector<2x8x8xf32>
    "tpu.trace_start"() <{level = 10 : i32, message = "bqk,bkd->bqd"}> : () -> ()
    %cst_108 = arith.constant dense<0.000000e+00> : vector<2x8x16xf32>
    %171 = tpu.matmul %170, %158, %cst_108 {dimension_numbers = #tpu.dot_dimension_numbers<[2], [1], [1], [2], [0, 0, 0, 1, 1, 2], [0], [0]>} : vector<2x8x8xf32>, vector<2x8x16xf32>, vector<2x8x16xf32> -> vector<2x8x16xf32>
    "tpu.trace_stop"() : () -> ()
    %172 = vector.shape_cast %171 : vector<2x8x16xf32> to vector<16x16xf32>
    %173 = vector.extract_strided_slice %152 {offsets = [0, 16], sizes = [16, 16], strides = [1, 1]} : vector<16x96xf32> to vector<16x16xf32>
    %174 = vector.shape_cast %173 : vector<16x16xf32> to vector<2x8x16xf32>
    %175 = vector.extract_strided_slice %152 {offsets = [0, 48], sizes = [16, 16], strides = [1, 1]} : vector<16x96xf32> to vector<16x16xf32>
    %176 = vector.shape_cast %175 : vector<16x16xf32> to vector<2x8x16xf32>
    %177 = vector.extract_strided_slice %152 {offsets = [0, 80], sizes = [16, 16], strides = [1, 1]} : vector<16x96xf32> to vector<16x16xf32>
    %178 = vector.shape_cast %177 : vector<16x16xf32> to vector<2x8x16xf32>
    "tpu.trace_start"() <{level = 10 : i32, message = "bqd,bkd->bqk"}> : () -> ()
    %cst_109 = arith.constant dense<0.000000e+00> : vector<2x8x8xf32>
    %179 = tpu.matmul %174, %176, %cst_109 {dimension_numbers = #tpu.dot_dimension_numbers<[2], [2], [1], [1], [0, 0, 0, 1, 1, 1], [0], [0]>} : vector<2x8x16xf32>, vector<2x8x16xf32>, vector<2x8x8xf32> -> vector<2x8x8xf32>
    "tpu.trace_stop"() : () -> ()
    %180 = arith.addf %179, %147 : vector<2x8x8xf32>
    %cst_110 = arith.constant dense<0xFF800000> : vector<2x8xf32>
    %181 = vector.multi_reduction <maximumf>, %180, %cst_110 [2] : vector<2x8x8xf32> to vector<2x8xf32>
    %182 = vector.shape_cast %181 : vector<2x8xf32> to vector<2x8x1xf32>
    %183 = vector.broadcast %182 : vector<2x8x1xf32> to vector<2x8x8xf32>
    %184 = arith.subf %180, %183 : vector<2x8x8xf32>
    %185 = math.exp %184 : vector<2x8x8xf32>
    %cst_111 = arith.constant dense<0.000000e+00> : vector<2x8xf32>
    %186 = vector.multi_reduction <add>, %185, %cst_111 [2] : vector<2x8x8xf32> to vector<2x8xf32>
    %187 = vector.shape_cast %186 : vector<2x8xf32> to vector<2x8x1xf32>
    %188 = tpu.reciprocal %187 {approx = true} : vector<2x8x1xf32> -> vector<2x8x1xf32>
    %189 = vector.broadcast %188 : vector<2x8x1xf32> to vector<2x8x8xf32>
    %190 = arith.mulf %185, %189 : vector<2x8x8xf32>
    "tpu.trace_start"() <{level = 10 : i32, message = "bqk,bkd->bqd"}> : () -> ()
    %cst_112 = arith.constant dense<0.000000e+00> : vector<2x8x16xf32>
    %191 = tpu.matmul %190, %178, %cst_112 {dimension_numbers = #tpu.dot_dimension_numbers<[2], [1], [1], [2], [0, 0, 0, 1, 1, 2], [0], [0]>} : vector<2x8x8xf32>, vector<2x8x16xf32>, vector<2x8x16xf32> -> vector<2x8x16xf32>
    "tpu.trace_stop"() : () -> ()
    %192 = vector.shape_cast %191 : vector<2x8x16xf32> to vector<16x16xf32>
    %193 = tpu.concatenate %172, %192 in 1 : vector<16x16xf32>, vector<16x16xf32> -> vector<16x32xf32>
    %c35 = arith.constant 35 : index
    %c0_113 = arith.constant 0 : index
    %194 = vector.load %arg3[%c35, %c0_113] : memref<790x128xf32, #tpu.memory_space<vmem>>, vector<32x32xf32>
    %cst_114 = arith.constant dense<0.000000e+00> : vector<16x32xf32>
    %195 = tpu.matmul %193, %194, %cst_114 {dimension_numbers = #tpu.dot_dimension_numbers<[1], [0], [0], [1], [0, 0, 1, 1], [], []>} : vector<16x32xf32>, vector<32x32xf32>, vector<16x32xf32> -> vector<16x32xf32>
    %c67_115 = arith.constant 67 : index
    %c0_116 = arith.constant 0 : index
    %196 = vector.load %arg3[%c67_115, %c0_116] : memref<790x128xf32, #tpu.memory_space<vmem>>, vector<1x32xf32>
    %197 = vector.broadcast %196 : vector<1x32xf32> to vector<16x32xf32>
    %198 = arith.addf %195, %197 : vector<16x32xf32>
    %199 = arith.addf %138, %198 : vector<16x32xf32>
    %c68_117 = arith.constant 68 : index
    %c0_118 = arith.constant 0 : index
    %200 = vector.load %arg3[%c68_117, %c0_118] : memref<790x128xf32, #tpu.memory_space<vmem>>, vector<2x32xf32>
    %cst_119 = arith.constant dense<0.000000e+00> : vector<16xf32>
    %201 = vector.multi_reduction <add>, %199, %cst_119 [1] : vector<16x32xf32> to vector<16xf32>
    %202 = vector.shape_cast %201 : vector<16xf32> to vector<16x1xf32>
    %cst_120 = arith.constant 3.200000e+01 : f32
    %203 = vector.broadcast %cst_120 : f32 to vector<16x1xf32>
    %204 = arith.divf %202, %203 : vector<16x1xf32>
    %205 = vector.broadcast %204 : vector<16x1xf32> to vector<16x32xf32>
    %206 = arith.subf %199, %205 : vector<16x32xf32>
    %207 = arith.mulf %206, %206 : vector<16x32xf32>
    %cst_121 = arith.constant dense<0.000000e+00> : vector<16xf32>
    %208 = vector.multi_reduction <add>, %207, %cst_121 [1] : vector<16x32xf32> to vector<16xf32>
    %209 = vector.shape_cast %208 : vector<16xf32> to vector<16x1xf32>
    %cst_122 = arith.constant 3.200000e+01 : f32
    %210 = vector.broadcast %cst_122 : f32 to vector<16x1xf32>
    %211 = arith.divf %209, %210 : vector<16x1xf32>
    %212 = vector.broadcast %204 : vector<16x1xf32> to vector<16x32xf32>
    %213 = arith.subf %199, %212 : vector<16x32xf32>
    %cst_123 = arith.constant 9.99999996E-13 : f32
    %214 = vector.broadcast %cst_123 : f32 to vector<16x1xf32>
    %215 = arith.addf %211, %214 : vector<16x1xf32>
    %216 = math.rsqrt %215 : vector<16x1xf32>
    %217 = vector.broadcast %216 : vector<16x1xf32> to vector<16x32xf32>
    %218 = arith.mulf %213, %217 : vector<16x32xf32>
    %219 = vector.extract_strided_slice %200 {offsets = [0, 0], sizes = [1, 32], strides = [1, 1]} : vector<2x32xf32> to vector<1x32xf32>
    %220 = vector.broadcast %219 : vector<1x32xf32> to vector<16x32xf32>
    %221 = arith.mulf %218, %220 : vector<16x32xf32>
    %222 = vector.extract_strided_slice %200 {offsets = [1, 0], sizes = [1, 32], strides = [1, 1]} : vector<2x32xf32> to vector<1x32xf32>
    %223 = vector.broadcast %222 : vector<1x32xf32> to vector<16x32xf32>
    %224 = arith.addf %221, %223 : vector<16x32xf32>
    %c70_124 = arith.constant 70 : index
    %c0_125 = arith.constant 0 : index
    %225 = vector.load %arg3[%c70_124, %c0_125] : memref<790x128xf32, #tpu.memory_space<vmem>>, vector<32x64xf32>
    %cst_126 = arith.constant dense<0.000000e+00> : vector<16x64xf32>
    %226 = tpu.matmul %224, %225, %cst_126 {dimension_numbers = #tpu.dot_dimension_numbers<[1], [0], [0], [1], [0, 0, 1, 1], [], []>} : vector<16x32xf32>, vector<32x64xf32>, vector<16x64xf32> -> vector<16x64xf32>
    %c102 = arith.constant 102 : index
    %c0_127 = arith.constant 0 : index
    %227 = vector.load %arg3[%c102, %c0_127] : memref<790x128xf32, #tpu.memory_space<vmem>>, vector<1x64xf32>
    %228 = vector.broadcast %227 : vector<1x64xf32> to vector<16x64xf32>
    %229 = arith.addf %226, %228 : vector<16x64xf32>
    %230 = arith.mulf %229, %229 : vector<16x64xf32>
    %231 = arith.mulf %229, %230 : vector<16x64xf32>
    %cst_128 = arith.constant 4.471500e-02 : f32
    %232 = vector.broadcast %cst_128 : f32 to vector<16x64xf32>
    %233 = arith.mulf %232, %231 : vector<16x64xf32>
    %234 = arith.addf %229, %233 : vector<16x64xf32>
    %cst_129 = arith.constant 0.797884583 : f32
    %235 = vector.broadcast %cst_129 : f32 to vector<16x64xf32>
    %236 = arith.mulf %235, %234 : vector<16x64xf32>
    %237 = math.tanh %236 : vector<16x64xf32>
    %cst_130 = arith.constant 1.000000e+00 : f32
    %238 = vector.broadcast %cst_130 : f32 to vector<16x64xf32>
    %239 = arith.addf %238, %237 : vector<16x64xf32>
    %cst_131 = arith.constant 5.000000e-01 : f32
    %240 = vector.broadcast %cst_131 : f32 to vector<16x64xf32>
    %241 = arith.mulf %240, %239 : vector<16x64xf32>
    %242 = arith.mulf %229, %241 : vector<16x64xf32>
    %c103 = arith.constant 103 : index
    %c0_132 = arith.constant 0 : index
    %243 = vector.load %arg3[%c103, %c0_132] : memref<790x128xf32, #tpu.memory_space<vmem>>, vector<64x32xf32>
    %cst_133 = arith.constant dense<0.000000e+00> : vector<16x32xf32>
    %244 = tpu.matmul %242, %243, %cst_133 {dimension_numbers = #tpu.dot_dimension_numbers<[1], [0], [0], [1], [0, 0, 1, 1], [], []>} : vector<16x64xf32>, vector<64x32xf32>, vector<16x32xf32> -> vector<16x32xf32>
    %c167 = arith.constant 167 : index
    %c0_134 = arith.constant 0 : index
    %245 = vector.load %arg3[%c167, %c0_134] : memref<790x128xf32, #tpu.memory_space<vmem>>, vector<1x32xf32>
    %246 = vector.broadcast %245 : vector<1x32xf32> to vector<16x32xf32>
    %247 = arith.addf %244, %246 : vector<16x32xf32>
    %248 = arith.addf %224, %247 : vector<16x32xf32>
    %c168 = arith.constant 168 : index
    %c0_135 = arith.constant 0 : index
    %249 = vector.load %arg3[%c168, %c0_135] : memref<790x128xf32, #tpu.memory_space<vmem>>, vector<2x32xf32>
    %cst_136 = arith.constant dense<0.000000e+00> : vector<16xf32>
    %250 = vector.multi_reduction <add>, %248, %cst_136 [1] : vector<16x32xf32> to vector<16xf32>
    %251 = vector.shape_cast %250 : vector<16xf32> to vector<16x1xf32>
    %cst_137 = arith.constant 3.200000e+01 : f32
    %252 = vector.broadcast %cst_137 : f32 to vector<16x1xf32>
    %253 = arith.divf %251, %252 : vector<16x1xf32>
    %254 = vector.broadcast %253 : vector<16x1xf32> to vector<16x32xf32>
    %255 = arith.subf %248, %254 : vector<16x32xf32>
    %256 = arith.mulf %255, %255 : vector<16x32xf32>
    %cst_138 = arith.constant dense<0.000000e+00> : vector<16xf32>
    %257 = vector.multi_reduction <add>, %256, %cst_138 [1] : vector<16x32xf32> to vector<16xf32>
    %258 = vector.shape_cast %257 : vector<16xf32> to vector<16x1xf32>
    %cst_139 = arith.constant 3.200000e+01 : f32
    %259 = vector.broadcast %cst_139 : f32 to vector<16x1xf32>
    %260 = arith.divf %258, %259 : vector<16x1xf32>
    %261 = vector.broadcast %253 : vector<16x1xf32> to vector<16x32xf32>
    %262 = arith.subf %248, %261 : vector<16x32xf32>
    %cst_140 = arith.constant 9.99999996E-13 : f32
    %263 = vector.broadcast %cst_140 : f32 to vector<16x1xf32>
    %264 = arith.addf %260, %263 : vector<16x1xf32>
    %265 = math.rsqrt %264 : vector<16x1xf32>
    %266 = vector.broadcast %265 : vector<16x1xf32> to vector<16x32xf32>
    %267 = arith.mulf %262, %266 : vector<16x32xf32>
    %268 = vector.extract_strided_slice %249 {offsets = [0, 0], sizes = [1, 32], strides = [1, 1]} : vector<2x32xf32> to vector<1x32xf32>
    %269 = vector.broadcast %268 : vector<1x32xf32> to vector<16x32xf32>
    %270 = arith.mulf %267, %269 : vector<16x32xf32>
    %271 = vector.extract_strided_slice %249 {offsets = [1, 0], sizes = [1, 32], strides = [1, 1]} : vector<2x32xf32> to vector<1x32xf32>
    %272 = vector.broadcast %271 : vector<1x32xf32> to vector<16x32xf32>
    %273 = arith.addf %270, %272 : vector<16x32xf32>
    %c170 = arith.constant 170 : index
    %c0_141 = arith.constant 0 : index
    %274 = vector.load %arg3[%c170, %c0_141] : memref<790x128xf32, #tpu.memory_space<vmem>>, vector<32x96xf32>
    %cst_142 = arith.constant dense<0.000000e+00> : vector<16x96xf32>
    %275 = tpu.matmul %273, %274, %cst_142 {dimension_numbers = #tpu.dot_dimension_numbers<[1], [0], [0], [1], [0, 0, 1, 1], [], []>} : vector<16x32xf32>, vector<32x96xf32>, vector<16x96xf32> -> vector<16x96xf32>
    %c202 = arith.constant 202 : index
    %c0_143 = arith.constant 0 : index
    %276 = vector.load %arg3[%c202, %c0_143] : memref<790x128xf32, #tpu.memory_space<vmem>>, vector<1x96xf32>
    %277 = vector.broadcast %276 : vector<1x96xf32> to vector<16x96xf32>
    %278 = arith.addf %275, %277 : vector<16x96xf32>
    %279 = vector.extract_strided_slice %278 {offsets = [0, 0], sizes = [16, 16], strides = [1, 1]} : vector<16x96xf32> to vector<16x16xf32>
    %280 = vector.shape_cast %279 : vector<16x16xf32> to vector<2x8x16xf32>
    %281 = vector.extract_strided_slice %278 {offsets = [0, 32], sizes = [16, 16], strides = [1, 1]} : vector<16x96xf32> to vector<16x16xf32>
    %282 = vector.shape_cast %281 : vector<16x16xf32> to vector<2x8x16xf32>
    %283 = vector.extract_strided_slice %278 {offsets = [0, 64], sizes = [16, 16], strides = [1, 1]} : vector<16x96xf32> to vector<16x16xf32>
    %284 = vector.shape_cast %283 : vector<16x16xf32> to vector<2x8x16xf32>
    "tpu.trace_start"() <{level = 10 : i32, message = "bqd,bkd->bqk"}> : () -> ()
    %cst_144 = arith.constant dense<0.000000e+00> : vector<2x8x8xf32>
    %285 = tpu.matmul %280, %282, %cst_144 {dimension_numbers = #tpu.dot_dimension_numbers<[2], [2], [1], [1], [0, 0, 0, 1, 1, 1], [0], [0]>} : vector<2x8x16xf32>, vector<2x8x16xf32>, vector<2x8x8xf32> -> vector<2x8x8xf32>
    "tpu.trace_stop"() : () -> ()
    %286 = arith.addf %285, %147 : vector<2x8x8xf32>
    %cst_145 = arith.constant dense<0xFF800000> : vector<2x8xf32>
    %287 = vector.multi_reduction <maximumf>, %286, %cst_145 [2] : vector<2x8x8xf32> to vector<2x8xf32>
    %288 = vector.shape_cast %287 : vector<2x8xf32> to vector<2x8x1xf32>
    %289 = vector.broadcast %288 : vector<2x8x1xf32> to vector<2x8x8xf32>
    %290 = arith.subf %286, %289 : vector<2x8x8xf32>
    %291 = math.exp %290 : vector<2x8x8xf32>
    %cst_146 = arith.constant dense<0.000000e+00> : vector<2x8xf32>
    %292 = vector.multi_reduction <add>, %291, %cst_146 [2] : vector<2x8x8xf32> to vector<2x8xf32>
    %293 = vector.shape_cast %292 : vector<2x8xf32> to vector<2x8x1xf32>
    %294 = tpu.reciprocal %293 {approx = true} : vector<2x8x1xf32> -> vector<2x8x1xf32>
    %295 = vector.broadcast %294 : vector<2x8x1xf32> to vector<2x8x8xf32>
    %296 = arith.mulf %291, %295 : vector<2x8x8xf32>
    "tpu.trace_start"() <{level = 10 : i32, message = "bqk,bkd->bqd"}> : () -> ()
    %cst_147 = arith.constant dense<0.000000e+00> : vector<2x8x16xf32>
    %297 = tpu.matmul %296, %284, %cst_147 {dimension_numbers = #tpu.dot_dimension_numbers<[2], [1], [1], [2], [0, 0, 0, 1, 1, 2], [0], [0]>} : vector<2x8x8xf32>, vector<2x8x16xf32>, vector<2x8x16xf32> -> vector<2x8x16xf32>
    "tpu.trace_stop"() : () -> ()
    %298 = vector.shape_cast %297 : vector<2x8x16xf32> to vector<16x16xf32>
    %299 = vector.extract_strided_slice %278 {offsets = [0, 16], sizes = [16, 16], strides = [1, 1]} : vector<16x96xf32> to vector<16x16xf32>
    %300 = vector.shape_cast %299 : vector<16x16xf32> to vector<2x8x16xf32>
    %301 = vector.extract_strided_slice %278 {offsets = [0, 48], sizes = [16, 16], strides = [1, 1]} : vector<16x96xf32> to vector<16x16xf32>
    %302 = vector.shape_cast %301 : vector<16x16xf32> to vector<2x8x16xf32>
    %303 = vector.extract_strided_slice %278 {offsets = [0, 80], sizes = [16, 16], strides = [1, 1]} : vector<16x96xf32> to vector<16x16xf32>
    %304 = vector.shape_cast %303 : vector<16x16xf32> to vector<2x8x16xf32>
    "tpu.trace_start"() <{level = 10 : i32, message = "bqd,bkd->bqk"}> : () -> ()
    %cst_148 = arith.constant dense<0.000000e+00> : vector<2x8x8xf32>
    %305 = tpu.matmul %300, %302, %cst_148 {dimension_numbers = #tpu.dot_dimension_numbers<[2], [2], [1], [1], [0, 0, 0, 1, 1, 1], [0], [0]>} : vector<2x8x16xf32>, vector<2x8x16xf32>, vector<2x8x8xf32> -> vector<2x8x8xf32>
    "tpu.trace_stop"() : () -> ()
    %306 = arith.addf %305, %147 : vector<2x8x8xf32>
    %cst_149 = arith.constant dense<0xFF800000> : vector<2x8xf32>
    %307 = vector.multi_reduction <maximumf>, %306, %cst_149 [2] : vector<2x8x8xf32> to vector<2x8xf32>
    %308 = vector.shape_cast %307 : vector<2x8xf32> to vector<2x8x1xf32>
    %309 = vector.broadcast %308 : vector<2x8x1xf32> to vector<2x8x8xf32>
    %310 = arith.subf %306, %309 : vector<2x8x8xf32>
    %311 = math.exp %310 : vector<2x8x8xf32>
    %cst_150 = arith.constant dense<0.000000e+00> : vector<2x8xf32>
    %312 = vector.multi_reduction <add>, %311, %cst_150 [2] : vector<2x8x8xf32> to vector<2x8xf32>
    %313 = vector.shape_cast %312 : vector<2x8xf32> to vector<2x8x1xf32>
    %314 = tpu.reciprocal %313 {approx = true} : vector<2x8x1xf32> -> vector<2x8x1xf32>
    %315 = vector.broadcast %314 : vector<2x8x1xf32> to vector<2x8x8xf32>
    %316 = arith.mulf %311, %315 : vector<2x8x8xf32>
    "tpu.trace_start"() <{level = 10 : i32, message = "bqk,bkd->bqd"}> : () -> ()
    %cst_151 = arith.constant dense<0.000000e+00> : vector<2x8x16xf32>
    %317 = tpu.matmul %316, %304, %cst_151 {dimension_numbers = #tpu.dot_dimension_numbers<[2], [1], [1], [2], [0, 0, 0, 1, 1, 2], [0], [0]>} : vector<2x8x8xf32>, vector<2x8x16xf32>, vector<2x8x16xf32> -> vector<2x8x16xf32>
    "tpu.trace_stop"() : () -> ()
    %318 = vector.shape_cast %317 : vector<2x8x16xf32> to vector<16x16xf32>
    %319 = tpu.concatenate %298, %318 in 1 : vector<16x16xf32>, vector<16x16xf32> -> vector<16x32xf32>
    %c203 = arith.constant 203 : index
    %c0_152 = arith.constant 0 : index
    %320 = vector.load %arg3[%c203, %c0_152] : memref<790x128xf32, #tpu.memory_space<vmem>>, vector<32x32xf32>
    %cst_153 = arith.constant dense<0.000000e+00> : vector<16x32xf32>
    %321 = tpu.matmul %319, %320, %cst_153 {dimension_numbers = #tpu.dot_dimension_numbers<[1], [0], [0], [1], [0, 0, 1, 1], [], []>} : vector<16x32xf32>, vector<32x32xf32>, vector<16x32xf32> -> vector<16x32xf32>
    %c235 = arith.constant 235 : index
    %c0_154 = arith.constant 0 : index
    %322 = vector.load %arg3[%c235, %c0_154] : memref<790x128xf32, #tpu.memory_space<vmem>>, vector<1x32xf32>
    %323 = vector.broadcast %322 : vector<1x32xf32> to vector<16x32xf32>
    %324 = arith.addf %321, %323 : vector<16x32xf32>
    %325 = arith.addf %273, %324 : vector<16x32xf32>
    %c236 = arith.constant 236 : index
    %c0_155 = arith.constant 0 : index
    %326 = vector.load %arg3[%c236, %c0_155] : memref<790x128xf32, #tpu.memory_space<vmem>>, vector<2x32xf32>
    %cst_156 = arith.constant dense<0.000000e+00> : vector<16xf32>
    %327 = vector.multi_reduction <add>, %325, %cst_156 [1] : vector<16x32xf32> to vector<16xf32>
    %328 = vector.shape_cast %327 : vector<16xf32> to vector<16x1xf32>
    %cst_157 = arith.constant 3.200000e+01 : f32
    %329 = vector.broadcast %cst_157 : f32 to vector<16x1xf32>
    %330 = arith.divf %328, %329 : vector<16x1xf32>
    %331 = vector.broadcast %330 : vector<16x1xf32> to vector<16x32xf32>
    %332 = arith.subf %325, %331 : vector<16x32xf32>
    %333 = arith.mulf %332, %332 : vector<16x32xf32>
    %cst_158 = arith.constant dense<0.000000e+00> : vector<16xf32>
    %334 = vector.multi_reduction <add>, %333, %cst_158 [1] : vector<16x32xf32> to vector<16xf32>
    %335 = vector.shape_cast %334 : vector<16xf32> to vector<16x1xf32>
    %cst_159 = arith.constant 3.200000e+01 : f32
    %336 = vector.broadcast %cst_159 : f32 to vector<16x1xf32>
    %337 = arith.divf %335, %336 : vector<16x1xf32>
    %338 = vector.broadcast %330 : vector<16x1xf32> to vector<16x32xf32>
    %339 = arith.subf %325, %338 : vector<16x32xf32>
    %cst_160 = arith.constant 9.99999996E-13 : f32
    %340 = vector.broadcast %cst_160 : f32 to vector<16x1xf32>
    %341 = arith.addf %337, %340 : vector<16x1xf32>
    %342 = math.rsqrt %341 : vector<16x1xf32>
    %343 = vector.broadcast %342 : vector<16x1xf32> to vector<16x32xf32>
    %344 = arith.mulf %339, %343 : vector<16x32xf32>
    %345 = vector.extract_strided_slice %326 {offsets = [0, 0], sizes = [1, 32], strides = [1, 1]} : vector<2x32xf32> to vector<1x32xf32>
    %346 = vector.broadcast %345 : vector<1x32xf32> to vector<16x32xf32>
    %347 = arith.mulf %344, %346 : vector<16x32xf32>
    %348 = vector.extract_strided_slice %326 {offsets = [1, 0], sizes = [1, 32], strides = [1, 1]} : vector<2x32xf32> to vector<1x32xf32>
    %349 = vector.broadcast %348 : vector<1x32xf32> to vector<16x32xf32>
    %350 = arith.addf %347, %349 : vector<16x32xf32>
    %c238 = arith.constant 238 : index
    %c0_161 = arith.constant 0 : index
    %351 = vector.load %arg3[%c238, %c0_161] : memref<790x128xf32, #tpu.memory_space<vmem>>, vector<32x64xf32>
    %cst_162 = arith.constant dense<0.000000e+00> : vector<16x64xf32>
    %352 = tpu.matmul %350, %351, %cst_162 {dimension_numbers = #tpu.dot_dimension_numbers<[1], [0], [0], [1], [0, 0, 1, 1], [], []>} : vector<16x32xf32>, vector<32x64xf32>, vector<16x64xf32> -> vector<16x64xf32>
    %c270 = arith.constant 270 : index
    %c0_163 = arith.constant 0 : index
    %353 = vector.load %arg3[%c270, %c0_163] : memref<790x128xf32, #tpu.memory_space<vmem>>, vector<1x64xf32>
    %354 = vector.broadcast %353 : vector<1x64xf32> to vector<16x64xf32>
    %355 = arith.addf %352, %354 : vector<16x64xf32>
    %356 = arith.mulf %355, %355 : vector<16x64xf32>
    %357 = arith.mulf %355, %356 : vector<16x64xf32>
    %cst_164 = arith.constant 4.471500e-02 : f32
    %358 = vector.broadcast %cst_164 : f32 to vector<16x64xf32>
    %359 = arith.mulf %358, %357 : vector<16x64xf32>
    %360 = arith.addf %355, %359 : vector<16x64xf32>
    %cst_165 = arith.constant 0.797884583 : f32
    %361 = vector.broadcast %cst_165 : f32 to vector<16x64xf32>
    %362 = arith.mulf %361, %360 : vector<16x64xf32>
    %363 = math.tanh %362 : vector<16x64xf32>
    %cst_166 = arith.constant 1.000000e+00 : f32
    %364 = vector.broadcast %cst_166 : f32 to vector<16x64xf32>
    %365 = arith.addf %364, %363 : vector<16x64xf32>
    %cst_167 = arith.constant 5.000000e-01 : f32
    %366 = vector.broadcast %cst_167 : f32 to vector<16x64xf32>
    %367 = arith.mulf %366, %365 : vector<16x64xf32>
    %368 = arith.mulf %355, %367 : vector<16x64xf32>
    %c271 = arith.constant 271 : index
    %c0_168 = arith.constant 0 : index
    %369 = vector.load %arg3[%c271, %c0_168] : memref<790x128xf32, #tpu.memory_space<vmem>>, vector<64x32xf32>
    %cst_169 = arith.constant dense<0.000000e+00> : vector<16x32xf32>
    %370 = tpu.matmul %368, %369, %cst_169 {dimension_numbers = #tpu.dot_dimension_numbers<[1], [0], [0], [1], [0, 0, 1, 1], [], []>} : vector<16x64xf32>, vector<64x32xf32>, vector<16x32xf32> -> vector<16x32xf32>
    %c335 = arith.constant 335 : index
    %c0_170 = arith.constant 0 : index
    %371 = vector.load %arg3[%c335, %c0_170] : memref<790x128xf32, #tpu.memory_space<vmem>>, vector<1x32xf32>
    %372 = vector.broadcast %371 : vector<1x32xf32> to vector<16x32xf32>
    %373 = arith.addf %370, %372 : vector<16x32xf32>
    %374 = arith.addf %350, %373 : vector<16x32xf32>
    %c336 = arith.constant 336 : index
    %c0_171 = arith.constant 0 : index
    %375 = vector.load %arg3[%c336, %c0_171] : memref<790x128xf32, #tpu.memory_space<vmem>>, vector<2x32xf32>
    %cst_172 = arith.constant dense<0.000000e+00> : vector<16xf32>
    %376 = vector.multi_reduction <add>, %374, %cst_172 [1] : vector<16x32xf32> to vector<16xf32>
    %377 = vector.shape_cast %376 : vector<16xf32> to vector<16x1xf32>
    %cst_173 = arith.constant 3.200000e+01 : f32
    %378 = vector.broadcast %cst_173 : f32 to vector<16x1xf32>
    %379 = arith.divf %377, %378 : vector<16x1xf32>
    %380 = vector.broadcast %379 : vector<16x1xf32> to vector<16x32xf32>
    %381 = arith.subf %374, %380 : vector<16x32xf32>
    %382 = arith.mulf %381, %381 : vector<16x32xf32>
    %cst_174 = arith.constant dense<0.000000e+00> : vector<16xf32>
    %383 = vector.multi_reduction <add>, %382, %cst_174 [1] : vector<16x32xf32> to vector<16xf32>
    %384 = vector.shape_cast %383 : vector<16xf32> to vector<16x1xf32>
    %cst_175 = arith.constant 3.200000e+01 : f32
    %385 = vector.broadcast %cst_175 : f32 to vector<16x1xf32>
    %386 = arith.divf %384, %385 : vector<16x1xf32>
    %387 = vector.broadcast %379 : vector<16x1xf32> to vector<16x32xf32>
    %388 = arith.subf %374, %387 : vector<16x32xf32>
    %cst_176 = arith.constant 9.99999996E-13 : f32
    %389 = vector.broadcast %cst_176 : f32 to vector<16x1xf32>
    %390 = arith.addf %386, %389 : vector<16x1xf32>
    %391 = math.rsqrt %390 : vector<16x1xf32>
    %392 = vector.broadcast %391 : vector<16x1xf32> to vector<16x32xf32>
    %393 = arith.mulf %388, %392 : vector<16x32xf32>
    %394 = vector.extract_strided_slice %375 {offsets = [0, 0], sizes = [1, 32], strides = [1, 1]} : vector<2x32xf32> to vector<1x32xf32>
    %395 = vector.broadcast %394 : vector<1x32xf32> to vector<16x32xf32>
    %396 = arith.mulf %393, %395 : vector<16x32xf32>
    %397 = vector.extract_strided_slice %375 {offsets = [1, 0], sizes = [1, 32], strides = [1, 1]} : vector<2x32xf32> to vector<1x32xf32>
    %398 = vector.broadcast %397 : vector<1x32xf32> to vector<16x32xf32>
    %399 = arith.addf %396, %398 : vector<16x32xf32>
    %400 = vector.shape_cast %399 : vector<16x32xf32> to vector<2x8x32xf32>
    %401 = vector.extract_strided_slice %400 {offsets = [0, 0, 0], sizes = [2, 1, 32], strides = [1, 1, 1]} : vector<2x8x32xf32> to vector<2x1x32xf32>
    %402 = vector.shape_cast %401 : vector<2x1x32xf32> to vector<2x32xf32>
    %c338 = arith.constant 338 : index
    %c0_177 = arith.constant 0 : index
    %403 = vector.load %arg3[%c338, %c0_177] : memref<790x128xf32, #tpu.memory_space<vmem>>, vector<64x128xf32>
    %c402 = arith.constant 402 : index
    %c0_178 = arith.constant 0 : index
    %404 = vector.load %arg3[%c402, %c0_178] : memref<790x128xf32, #tpu.memory_space<vmem>>, vector<2x128xf32>
    %405 = vector.extract_strided_slice %403 {offsets = [0, 0], sizes = [32, 128], strides = [1, 1]} : vector<64x128xf32> to vector<32x128xf32>
    %cst_179 = arith.constant dense<0.000000e+00> : vector<2x128xf32>
    %406 = tpu.matmul %402, %405, %cst_179 {dimension_numbers = #tpu.dot_dimension_numbers<[1], [0], [0], [1], [0, 0, 1, 1], [], []>} : vector<2x32xf32>, vector<32x128xf32>, vector<2x128xf32> -> vector<2x128xf32>
    %407 = vector.extract_strided_slice %404 {offsets = [0, 0], sizes = [1, 128], strides = [1, 1]} : vector<2x128xf32> to vector<1x128xf32>
    %408 = vector.broadcast %407 : vector<1x128xf32> to vector<2x128xf32>
    %409 = arith.addf %406, %408 : vector<2x128xf32>
    %cst_180 = arith.constant 0.000000e+00 : f32
    %410 = vector.broadcast %cst_180 : f32 to vector<2x128xf32>
    %411 = arith.maximumf %409, %410 : vector<2x128xf32>
    %412 = vector.extract_strided_slice %403 {offsets = [32, 0], sizes = [32, 128], strides = [1, 1]} : vector<64x128xf32> to vector<32x128xf32>
    %cst_181 = arith.constant dense<0.000000e+00> : vector<2x128xf32>
    %413 = tpu.matmul %402, %412, %cst_181 {dimension_numbers = #tpu.dot_dimension_numbers<[1], [0], [0], [1], [0, 0, 1, 1], [], []>} : vector<2x32xf32>, vector<32x128xf32>, vector<2x128xf32> -> vector<2x128xf32>
    %414 = vector.extract_strided_slice %404 {offsets = [1, 0], sizes = [1, 128], strides = [1, 1]} : vector<2x128xf32> to vector<1x128xf32>
    %415 = vector.broadcast %414 : vector<1x128xf32> to vector<2x128xf32>
    %416 = arith.addf %413, %415 : vector<2x128xf32>
    %cst_182 = arith.constant 0.000000e+00 : f32
    %417 = vector.broadcast %cst_182 : f32 to vector<2x128xf32>
    %418 = arith.maximumf %416, %417 : vector<2x128xf32>
    %c404 = arith.constant 404 : index
    %c0_183 = arith.constant 0 : index
    %419 = vector.load %arg3[%c404, %c0_183] : memref<790x128xf32, #tpu.memory_space<vmem>>, vector<256x128xf32>
    %420 = vector.extract_strided_slice %419 {offsets = [0, 0], sizes = [128, 128], strides = [1, 1]} : vector<256x128xf32> to vector<128x128xf32>
    %cst_184 = arith.constant dense<0.000000e+00> : vector<2x128xf32>
    %421 = tpu.matmul %411, %420, %cst_184 {dimension_numbers = #tpu.dot_dimension_numbers<[1], [0], [0], [1], [0, 0, 1, 1], [], []>} : vector<2x128xf32>, vector<128x128xf32>, vector<2x128xf32> -> vector<2x128xf32>
    %422 = vector.extract_strided_slice %419 {offsets = [128, 0], sizes = [128, 128], strides = [1, 1]} : vector<256x128xf32> to vector<128x128xf32>
    %cst_185 = arith.constant dense<0.000000e+00> : vector<2x128xf32>
    %423 = tpu.matmul %418, %422, %cst_185 {dimension_numbers = #tpu.dot_dimension_numbers<[1], [0], [0], [1], [0, 0, 1, 1], [], []>} : vector<2x128xf32>, vector<128x128xf32>, vector<2x128xf32> -> vector<2x128xf32>
    %424 = arith.addf %421, %423 : vector<2x128xf32>
    %c660 = arith.constant 660 : index
    %c0_186 = arith.constant 0 : index
    %425 = vector.load %arg3[%c660, %c0_186] : memref<790x128xf32, #tpu.memory_space<vmem>>, vector<1x128xf32>
    %426 = vector.broadcast %425 : vector<1x128xf32> to vector<2x128xf32>
    %427 = arith.addf %424, %426 : vector<2x128xf32>
    %cst_187 = arith.constant 0.000000e+00 : f32
    %428 = vector.broadcast %cst_187 : f32 to vector<2x128xf32>
    %429 = arith.maximumf %427, %428 : vector<2x128xf32>
    %c661 = arith.constant 661 : index
    %c0_188 = arith.constant 0 : index
    %430 = vector.load %arg3[%c661, %c0_188] : memref<790x128xf32, #tpu.memory_space<vmem>>, vector<128x4xf32>
    %cst_189 = arith.constant dense<0.000000e+00> : vector<2x4xf32>
    %431 = tpu.matmul %429, %430, %cst_189 {dimension_numbers = #tpu.dot_dimension_numbers<[1], [0], [0], [1], [0, 0, 1, 1], [], []>} : vector<2x128xf32>, vector<128x4xf32>, vector<2x4xf32> -> vector<2x4xf32>
    %c789 = arith.constant 789 : index
    %c0_190 = arith.constant 0 : index
    %432 = vector.load %arg3[%c789, %c0_190] : memref<790x128xf32, #tpu.memory_space<vmem>>, vector<1x4xf32>
    %433 = vector.broadcast %432 : vector<1x4xf32> to vector<2x4xf32>
    %434 = arith.addf %431, %433 : vector<2x4xf32>
    %c0_191 = arith.constant 0 : index
    %c0_192 = arith.constant 0 : index
    %435 = vector.load %arg4[%c0_191, %c0_192] : memref<2x4xf32, #tpu.memory_space<vmem>>, vector<2x4xf32>
    tpu.vector_store %arg4[%c0_191, %c0_192], %434 {strides = array<i32>} : memref<2x4xf32, #tpu.memory_space<vmem>>, vector<2x4xf32>,
    return
  }
}

</mosaic_0001>

<bundles_post_ra>
// kernel: model_forward.1
= control target key start
LH: loop header
LB: loop body
LE: loop exit
PB: predicated region body
PF: predicated region fallthrough
CT: control target
= control target key end

     0   :  { %9 = vsyncpa [#allocation6], 0  ;;  %s2157_s0 = inlined_call_operand.vmem [shape: s32[2,8], index: 0, kind: input, shape index: {}]   ;;  %s2158_s1 = inlined_call_operand.vmem [shape: s32[2,8], index: 1, kind: input, shape index: {}]   ;;  %s2159_s2 = inlined_call_operand.vmem [shape: f32[82,32], index: 2, kind: input, shape index: {}]   ;;  %s2160_s3 = inlined_call_operand.hbm [shape: f32[790,128], index: 3, kind: input, shape index: {}]   ;;  %s2161_s4 = inlined_call_operand.hbm [shape: f32[2,4], index: 4, kind: output, shape index: {}]  }
   0x1   :  { %10 = vsyncpa [#allocation4], 0 }
   0x2   :  { %11 = vsyncpa [#allocation5], 0  ;;  %s17_s17 = sshll.u32 %s2157_s0, 4  ;;  %s29_s20 = sshll.u32 %s2160_s3, 4  ;;  %s18_s17 = int_to_ptr.vmem [resolvable:$true] %s17_s17  ;;  %s30_s20 = int_to_ptr.hbm [resolvable:$true] %s29_s20 }
   0x3   :  { %s1739_s21 = smov [#allocation3]   ;;  %s1740_s22 = smov [#allocation7]  }
   0x4   :  { %20 = dma.vmem_to_smem %s18_s17, 32, %s1739_s21, [#allocation6]  }
   0x5   :  { %s31_s23 = sshll.u32 %s1740_s22, 4  ;;  %s1741_s24 = smov 128   ;;  %s32_s23 = int_to_ptr.vmem [resolvable:$true] %s31_s23 }
   0x6   :  { %s1742_s25 = smov 8  }
   0x7   :  { %37 = dma.hbm_to_vmem [thread:$0]  %s30_s20, 12672, %s32_s23, [#allocation4], %s1741_s24, %s1741_s24, %s1742_s25  }
   0x8   :  { %1733 = dma.done.wait [#allocation6], 32  }
   0x9   :  { %1734 = vsyncadd [#allocation6], 4294967264 }
   0xa   :  { %1735 = dma.done.wait [#allocation4], 12672  }
   0xb   :  { %1736 = vsyncadd [#allocation4], 4294954624 }
   0xc   :  { %46 = sfence }
   0xd   :  { %s48_s0 = sld [smem:[#allocation3]]  ;;  %v51_v0 = vld [vmem:[%s2159_s2 + $0x40] sm:$0x1]  ;;  %v1791_v1 = vld [vmem:[%s2159_s2 + $0x50] sm:$0x1]  ;;  %vm54_vm0 = vcmask 253952  }
   0xe   :  { %s1516_s26 = sld [smem:[#allocation3 + $0x1]]  ;;  %v59_v2 = vld [vmem:[%s2159_s2 + $0x41] sm:$0x1]  ;;  %v66_v3 = vld [vmem:[%s2159_s2 + $0x42] sm:$0x1]  ;;  %vm164_vm1 = vcmask 261120  }
   0xf   :  { %s1517_s27 = sld [smem:[#allocation3 + $0x2]]  ;;  %v73_v4 = vld [vmem:[%s2159_s2 + $0x43] sm:$0x1]  ;;  %v80_v6 = vld [vmem:[%s2159_s2 + $0x44] sm:$0x1]  ;;  %vm269_vm9 = vcmask 130048  }
  0x10   :  { %s1518_s28 = sld [smem:[#allocation3 + $0x3]]  ;;  %v87_v9 = vld [vmem:[%s2159_s2 + $0x45] sm:$0x1]  ;;  %v94_v12 = vld [vmem:[%s2159_s2 + $0x46] sm:$0x1]  ;;  %vm321_vm11 = vcmask 64512  }
  0x11   :  { %s1786_s30 = sld [smem:[#allocation3 + $0x4]]  ;;  %v101_v16 = vld [vmem:[%s2159_s2 + $0x47] sm:$0x1]  ;;  %v108_v20 = vld [vmem:[%s2159_s2 + $0x40] sm:$0x1]  ;;  %s1749_s21 = smov 48  }
  0x12   :  { %s1796_s9 = sld [smem:[#allocation3 + $0x5]]  ;;  %v115_v24 = vld [vmem:[%s2159_s2 + $0x41] sm:$0x1]  ;;  %v122_v28 = vld [vmem:[%s2159_s2 + $0x42] sm:$0x1]  ;;  %s1750_s22 = smov 16  }
  0x13   :  { %s49_s12 = scalar_lea.vmem %s2159_s2, %s48_s0  ;;  %s1807_s17 = sld [smem:[#allocation3 + $0x6]]  ;;  %v129_v32 = vld [vmem:[%s2159_s2 + $0x43] sm:$0x1]  ;;  %v136_v36 = vld [vmem:[%s2159_s2 + $0x44] sm:$0x1] }
  0x14   :  { %v50_v5 = vld [vmem:[%s49_s12] sm:$0x1]  ;;  %s57_s20 = scalar_lea.vmem %s2159_s2, %s1516_s26  ;;  %s1815_s23 = sld [smem:[#allocation3 + $0x7]]  ;;  %v143_v40 = vld [vmem:[%s2159_s2 + $0x45] sm:$0x1] }
  0x15   :  { %v52_v7 = vadd.f32 %v51_v0, %v50_v5  ;;  %v58_v8 = vld [vmem:[%s57_s20] sm:$0x1]  ;;  %s64_s0 = scalar_lea.vmem %s2159_s2, %s1517_s27  ;;  %s1823_s5 = sld [smem:[#allocation3 + $0x80]]  ;;  %v150_v44 = vld [vmem:[%s2159_s2 + $0x46] sm:$0x1] }
  0x16   :  { %v60_v10 = vadd.f32 %v59_v2, %v58_v8  ;;  %v65_v11 = vld [vmem:[%s64_s0] sm:$0x1]  ;;  %s71_s7 = scalar_lea.vmem %s2159_s2, %s1518_s28  ;;  %s1831_s11 = sld [smem:[#allocation3 + $0x81]]  ;;  %v157_v51 = vld [vmem:[%s2159_s2 + $0x47] sm:$0x1] }
  0x17   :  { %v53_v13 = vadd.f32 %v52_v7, %v1791_v1  ;;  %v67_v14 = vadd.f32 %v66_v3, %v65_v11  ;;  %v72_v15 = vld [vmem:[%s71_s7] sm:$0x1]  ;;  %s78_s13 = scalar_lea.vmem %s2159_s2, %s1786_s30  ;;  %s1841_s28 = sld [smem:[#allocation3 + $0x82]] }
  0x18   :  { %v61_v17 = vadd.f32 %v60_v10, %v1791_v1  ;;  %v74_v18 = vadd.f32 %v73_v4, %v72_v15  ;;  %v79_v19 = vld [vmem:[%s78_s13] sm:$0x1]  ;;  %s85_s19 = scalar_lea.vmem %s2159_s2, %s1796_s9  ;;  %s1851_s30 = sld [smem:[#allocation3 + $0x83]] }
  0x19   :  { %55 = vst.msk [vmem:[#allocation2] sm:$0x1] %vm54_vm0, %v53_v13  ;;  %v68_v21 = vadd.f32 %v67_v14, %v1791_v1  ;;  %v81_v22 = vadd.f32 %v80_v6, %v79_v19  ;;  %v86_v23 = vld [vmem:[%s85_s19] sm:$0x1]  ;;  %s92_s25 = scalar_lea.vmem %s2159_s2, %s1807_s17  ;;  %s1862_s9 = sld [smem:[#allocation3 + $0x84]]  ;;  %v1743_v6 = vmov 32.0  }
  0x1a   :  { %62 = vst.msk [vmem:[#allocation2 + $0x1] sm:$0x1] %vm54_vm0, %v61_v17  ;;  %v75_v25 = vadd.f32 %v74_v18, %v1791_v1  ;;  %v88_v26 = vadd.f32 %v87_v9, %v86_v23  ;;  %v93_v27 = vld [vmem:[%s92_s25] sm:$0x1]  ;;  %s99_s6 = scalar_lea.vmem %s2159_s2, %s1815_s23  ;;  %s1873_s17 = sld [smem:[#allocation3 + $0x85]]  ;;  %1611 = vrcp.f32 %v1743_v6  ;;  %v233_v23 = vld [vmem:[#allocation7 + $0x12] sm:$0xff] }
  0x1b   :  { %69 = vst.msk [vmem:[#allocation2 + $0x2] sm:$0x1] %vm54_vm0, %v68_v21  ;;  %v82_v29 = vadd.f32 %v81_v22, %v1791_v1  ;;  %v95_v30 = vadd.f32 %v94_v12, %v93_v27  ;;  %v100_v31 = vld [vmem:[%s99_s6] sm:$0x1]  ;;  %s106_s12 = scalar_lea.vmem %s2159_s2, %s1823_s5  ;;  %s1884_s23 = sld [smem:[#allocation3 + $0x86]]  ;;  %v234_v22 = vld [vmem:[#allocation7 + $0x1a] sm:$0xff] }
  0x1c   :  { %76 = vst.msk [vmem:[#allocation2 + $0x3] sm:$0x1] %vm54_vm0, %v75_v25  ;;  %v89_v33 = vadd.f32 %v88_v26, %v1791_v1  ;;  %v102_v34 = vadd.f32 %v101_v16, %v100_v31  ;;  %v107_v35 = vld [vmem:[%s106_s12] sm:$0x1]  ;;  %s113_s18 = scalar_lea.vmem %s2159_s2, %s1831_s11  ;;  %s1895_s5 = sld [smem:[#allocation3 + $0x87]]  ;;  %255 = vmatpush.msra.mxu0 %v234_v22  ;;  %v231_v25 = vld [vmem:[#allocation7 + $0x2] sm:$0xff] }
  0x1d   :  { %83 = vst.msk [vmem:[#allocation2 + $0x4] sm:$0x1] %vm54_vm0, %v82_v29  ;;  %v96_v37 = vadd.f32 %v95_v30, %v1791_v1  ;;  %v109_v38 = vadd.f32 %v108_v20, %v107_v35  ;;  %v114_v39 = vld [vmem:[%s113_s18] sm:$0x1]  ;;  %s120_s24 = scalar_lea.vmem %s2159_s2, %s1841_s28  ;;  %s1746_s19 = smov 112  }
  0x1e   :  { %90 = vst.msk [vmem:[#allocation2 + $0x5] sm:$0x1] %vm54_vm0, %v89_v33  ;;  %v103_v41 = vadd.f32 %v102_v34, %v1791_v1  ;;  %v116_v42 = vadd.f32 %v115_v24, %v114_v39  ;;  %v121_v43 = vld [vmem:[%s120_s24] sm:$0x1]  ;;  %s127_s3 = scalar_lea.vmem %s2159_s2, %s1851_s30  ;;  %256 = vmatpush.msra.mxu0 %v233_v23  ;;  %s1751_s24 = smov [#allocation8]  }
  0x1f   :  { %97 = vst.msk [vmem:[#allocation2 + $0x6] sm:$0x1] %vm54_vm0, %v96_v37  ;;  %v110_v45 = vadd.f32 %v109_v38, %v1791_v1  ;;  %v123_v46 = vadd.f32 %v122_v28, %v121_v43  ;;  %v128_v47 = vld [vmem:[%s127_s3] sm:$0x1]  ;;  %s134_s8 = scalar_lea.vmem %s2159_s2, %s1862_s9  ;;  %v163_v37 = vld [vmem:[#allocation7] sm:$0x3] }
  0x20   :  { %104 = vst.msk [vmem:[#allocation2 + $0x7] sm:$0x1] %vm54_vm0, %v103_v41  ;;  %v117_v48 = vadd.f32 %v116_v42, %v1791_v1  ;;  %v130_v49 = vadd.f32 %v129_v32, %v128_v47  ;;  %v135_v50 = vld [vmem:[%s134_s8] sm:$0x1]  ;;  %s141_s27 = scalar_lea.vmem %s2159_s2, %s1873_s17  ;;  %v1612_v7 = vpop.eup %1611  ;;  %v216_v41 = vperm.slane %v163_v37, 0  ;;  %s1487_s25 = sshll.u32 %s1751_s24, 4  ;;  %s1488_s25 = int_to_ptr.vmem [resolvable:$true] %s1487_s25 }
  0x21   :  { %111 = vst.msk [vmem:[#allocation2 + $0x8] sm:$0x1] %vm54_vm0, %v110_v45  ;;  %v124_v52 = vadd.f32 %v123_v46, %v1791_v1  ;;  %v137_v53 = vadd.f32 %v136_v36, %v135_v50  ;;  %v142_v54 = vld [vmem:[%s141_s27] sm:$0x1]  ;;  %s148_s15 = scalar_lea.vmem %s2159_s2, %s1884_s23  ;;  %v172_v8 = vmul.f32 32.0, %v1612_v7  ;;  %vm176_vm2 = vweird.f32 %v1612_v7  ;;  %s1745_s23 = smov 96  }
  0x22   :  { %118 = vst.msk [vmem:[#allocation2 + $0x9] sm:$0x1] %vm54_vm0, %v117_v48  ;;  %v131_v55 = vadd.f32 %v130_v49, %v1791_v1  ;;  %v144_v56 = vadd.f32 %v143_v40, %v142_v54  ;;  %v149_v57 = vld [vmem:[%s148_s15] sm:$0x1]  ;;  %s155_s18 = scalar_lea.vmem %s2159_s2, %s1895_s5  ;;  %v219_v45 = vperm.slane %v163_v37, 1  ;;  %s1744_s2 = smov 80  }
  0x23   :  { %125 = vst.msk [vmem:[#allocation2 + $0xa] sm:$0x1] %vm54_vm0, %v124_v52  ;;  %v138_v58 = vadd.f32 %v137_v53, %v1791_v1  ;;  %v151_v59 = vadd.f32 %v150_v44, %v149_v57  ;;  %v156_v60 = vld [vmem:[%s155_s18] sm:$0x1]  ;;  %v173_v9 = vsub.f32 1.0, %v172_v8  ;;  %s1489_s29 = sshll.u32 %s2161_s4, 4  ;;  %s1490_s29 = int_to_ptr.hbm [resolvable:$true] %s1489_s29 }
  0x24   :  { %132 = vst.msk [vmem:[#allocation2 + $0xb] sm:$0x1] %vm54_vm0, %v131_v55  ;;  %v145_v61 = vadd.f32 %v144_v56, %v1791_v1  ;;  %v158_v62 = vadd.f32 %v157_v51, %v156_v60  ;;  %v232_v24 = vld [vmem:[#allocation7 + $0xa] sm:$0xff]  ;;  %v1601_v55 = vld [vmem:[#allocation7 + $0x22] ss:$0 sm:$0xff] }
  0x25   :  { %139 = vst.msk [vmem:[#allocation2 + $0xc] sm:$0x1] %vm54_vm0, %v138_v58  ;;  %v152_v63 = vadd.f32 %v151_v59, %v1791_v1  ;;  %v174_v10 = vmul.f32 %v1612_v7, %v173_v9  ;;  %257 = vmatpush.msra.mxu0 %v232_v24 }
  0x26   :  { %146 = vst.msk [vmem:[#allocation2 + $0xd] sm:$0x1] %vm54_vm0, %v145_v61  ;;  %v159_v0 = vadd.f32 %v158_v62, %v1791_v1 }
  0x27   :  { %v161_v2 = vld [vmem:[#allocation2] sm:$0xff]  ;;  %153 = vst.msk [vmem:[#allocation2 + $0xe] sm:$0x1] %vm54_vm0, %v152_v63  ;;  %v175_v11 = vadd.f32 %v1612_v7, %v174_v10  ;;  %258 = vmatpush.msra.mxu0 %v231_v25 }
  0x28   :  { %v165_v3 = vsel %vm164_vm1, %v161_v2, 0.0  ;;  %160 = vst.msk [vmem:[#allocation2 + $0xf] sm:$0x1] %vm54_vm0, %v159_v0 }
  0x29   :  { %166 = vadd.xlane.f32.xlu0 %v165_v3  ;;  %v1954_v1 = vsel %vm176_vm2, %v1612_v7, %v175_v11  ;;  %v222_v3 = vld [vmem:[%s2158_s1] sm:$0x3]  ;;  %s1748_s1 = smov 64  }
  0x2a   :  { %vm223_vm10 = vcmp.gt.s32.totalorder %v222_v3, 0  ;;  %v538_v3 = vld [vmem:[#allocation7 + $0x33] sm:$0xff] }
  0x2f   :  { %v162_v4 = vld [vmem:[#allocation2 + $0x8] sm:$0xff] }
  0x30   :  { %v168_v5 = vsel %vm164_vm1, %v162_v4, 0.0 }
  0x31   :  { %169 = vadd.xlane.f32.xlu0 %v168_v5 }
  0x9c   :  { %v167_v12 = vpop.xlane.xlu0 %166 }
  0x9d   :  { %v178_v13 = vmul.f32 %v1954_v1, %v167_v12 }
  0x9f   :  { %v180_v14 = vsub.f32 %v161_v2, %v178_v13 }
  0xa1   :  { %v182_v15 = vmul.f32 %v180_v14, %v180_v14 }
  0xa3   :  { %v184_v16 = vsel %vm164_vm1, %v182_v15, 0.0 }
  0xa4   :  { %185 = vadd.xlane.f32.xlu1 %v184_v16  ;;  %v170_v17 = vpop.xlane.xlu0 %169 }
  0xa5   :  { %v179_v18 = vmul.f32 %v1954_v1, %v170_v17 }
  0xa7   :  { %v181_v19 = vsub.f32 %v162_v4, %v179_v18  ;;  %v1747_v4 = vmov -1e+09  }
  0xa8   :  { %v224_v5 = vsel %vm223_vm10, 0.0, %v1747_v4  ;;  %v537_v4 = vld [vmem:[#allocation7 + $0x2b] sm:$0xff] }
  0xa9   :  { %v183_v20 = vmul.f32 %v181_v19, %v181_v19  ;;  %v1999_v6 = vperm.slane %v224_v5, 0  ;;  %v226_v10 = vrot.slane %v224_v5, 1  ;;  %v536_v5 = vld [vmem:[#allocation7 + $0x23] sm:$0xff] }
  0xab   :  { %v187_v21 = vsel %vm164_vm1, %v183_v20, 0.0  ;;  %v2003_v11 = vperm.slane %v226_v10, 0 }
  0xac   :  { %188 = vadd.xlane.f32.xlu1 %v187_v21 }
 0x117   :  { %v186_v26 = vpop.xlane.xlu1 %185 }
 0x118   :  { %v190_v27 = vmul.f32 %v186_v26, %v1954_v1 }
 0x11a   :  { %v192_v28 = vadd.f32 1e-12, %v190_v27 }
 0x11c   :  { %1613 = vrsqrt.f32 %v192_v28  ;;  %vm200_vm4 = vweird.f32 %v192_v28 }
 0x11f   :  { %v189_v29 = vpop.xlane.xlu1 %188 }
 0x120   :  { %v191_v30 = vmul.f32 %v189_v29, %v1954_v1 }
 0x122   :  { %v1614_v31 = vpop.eup %1613  ;;  %v193_v32 = vadd.f32 1e-12, %v191_v30 }
 0x123   :  { %v195_v33 = vmul.f32 %v1614_v31, %v192_v28  ;;  %vm201_vm3 = vweird.f32 %v1614_v31 }
 0x124   :  { %1615 = vrsqrt.f32 %v193_v32  ;;  %vm202_vm5 = vmor %vm200_vm4, %vm201_vm3  ;;  %vm210_vm7 = vweird.f32 %v193_v32  ;;  %vm687_vm3 = vcmask 523264  }
 0x125   :  { %v196_v34 = vmul.f32 %v1614_v31, %v195_v33 }
 0x127   :  { %v197_v35 = vmul.f32 0.5, %v196_v34 }
 0x129   :  { %v198_v36 = vsub.f32 1.5, %v197_v35 }
 0x12a   :  { %v1616_v38 = vpop.eup %1615 }
 0x12b   :  { %v199_v39 = vmul.f32 %v1614_v31, %v198_v36  ;;  %v205_v40 = vmul.f32 %v1616_v38, %v193_v32  ;;  %vm211_vm6 = vweird.f32 %v1616_v38 }
 0x12c   :  { %vm212_vm8 = vmor %vm210_vm7, %vm211_vm6 }
 0x12d   :  { %v203_v42 = vsel %vm202_vm5, %v1614_v31, %v199_v39  ;;  %v206_v43 = vmul.f32 %v1616_v38, %v205_v40 }
 0x12e   :  { %v214_v44 = vmul.f32 %v203_v42, %v180_v14 }
 0x12f   :  { %v207_v46 = vmul.f32 0.5, %v206_v43 }
 0x130   :  { %v217_v47 = vmul.f32 %v216_v41, %v214_v44 }
 0x131   :  { %v208_v48 = vsub.f32 1.5, %v207_v46 }
 0x132   :  { %v1962_v49 = vadd.f32 %v219_v45, %v217_v47 }
 0x133   :  { %v209_v50 = vmul.f32 %v1616_v38, %v208_v48 }
 0x134   :  { %1531 = vmatmul.msk.f32.vlgmr.msra.gmra.mxu0 %vm164_vm1, %v1962_v49 }
 0x135   :  { %v213_v51 = vsel %vm212_vm8, %v1616_v38, %v209_v50 }
 0x136   :  { %v215_v52 = vmul.f32 %v213_v51, %v181_v19 }
 0x138   :  { %v218_v53 = vmul.f32 %v216_v41, %v215_v52 }
 0x13a   :  { %v1966_v54 = vadd.f32 %v219_v45, %v218_v53 }
 0x13c   :  { %1532 = vmatmul.msk.f32.gmra.mxu0 %vm164_vm1, %v1966_v54 }
 0x1b1   :  { %v260_v56 = vpop.f32.mrf.mxu0 }
 0x1b2   :  { %v1970_v57 = vadd.f32 %v1601_v55, %v260_v56 }
 0x1b4   :  { %398 = vrot.lane.b32.xlu0 %v1970_v57, %s1744_s2  ;;  %267 = vrot.lane.b32.xlu2 %v1970_v57, %s1745_s23 }
 0x1b5   :  { %396 = vrot.lane.b32.xlu1 %v1970_v57, %s1746_s19 }
 0x1b9   :  { %v263_v58 = vpop.f32.mrf.mxu0 }
 0x1ba   :  { %v1978_v59 = vadd.f32 %v1601_v55, %v263_v58 }
 0x1bc   :  { %295 = vrot.lane.b32.xlu2 %v1978_v59, %s1745_s23  ;;  %v1586_v21 = vpack.i.bf16 %v1978_v59, %v1970_v57 }
 0x1c4   :  { %426 = vrot.lane.b32.xlu2 %v1978_v59, %s1744_s2 }
 0x1cc   :  { %424 = vrot.lane.b32.xlu2 %v1978_v59, %s1746_s19 }
 0x20e   :  { %v268_v60 = vpop.permute.xlu2 %267 }
 0x20f   :  { %1533 = vmatpush.xpose.msk.msra.mxu1 %vm269_vm9, %v268_v60 }
 0x212   :  { %1534 = vmatmul.msk.f32.vlgmr.msra.gmra.mxu1 %vm269_vm9, %v1970_v57 }
 0x216   :  { %v296_v61 = vpop.permute.xlu2 %295 }
 0x217   :  { %1535 = vmatpush.xpose.msk.msra.mxu2 %vm269_vm9, %v296_v61 }
 0x21a   :  { %1536 = vmatmul.msk.f32.vlgmr.msra.gmra.mxu2 %vm269_vm9, %v1978_v59 }
 0x21e   :  { %v427_v62 = vpop.permute.xlu2 %426 }
 0x21f   :  { %1541 = vmatpush.xpose.msk.msrb.mxu2 %vm269_vm9, %v427_v62 }
 0x226   :  { %v425_v63 = vpop.permute.xlu2 %424  ;;  %v399_v0 = vpop.permute.xlu0 %398 }
 0x227   :  { %1539 = vmatpush.xpose.msk.msrb.mxu1 %vm269_vm9, %v399_v0  ;;  %1542 = vmatmul.msk.f32.vlgmr.msrb.gmra.mxu2 %vm269_vm9, %v425_v63  ;;  %v397_v2 = vpop.permute.xlu1 %396 }
 0x22a   :  { %1540 = vmatmul.msk.f32.vlgmr.msrb.gmra.mxu1 %vm269_vm9, %v397_v2  ;;  %v539_v2 = vld [vmem:[#allocation7 + $0x3b] sm:$0xff] }
 0x22b   :  { %560 = vmatpush.msra.mxu2 %v539_v2  ;;  %v683_v2 = vld [vmem:[#allocation7 + $0x97] sm:$0xff] }
 0x22d   :  { %561 = vmatpush.msra.mxu2 %v538_v3  ;;  %v682_v3 = vld [vmem:[#allocation7 + $0x8f] sm:$0xff] }
 0x22f   :  { %562 = vmatpush.msra.mxu2 %v537_v4  ;;  %v681_v4 = vld [vmem:[#allocation7 + $0x87] sm:$0xff] }
 0x231   :  { %563 = vmatpush.msra.mxu2 %v536_v5  ;;  %v680_v5 = vld [vmem:[#allocation7 + $0x7f] sm:$0xff] }
 0x28f   :  { %v291_v7 = vpop.f32.mrf.mxu1 }
 0x290   :  { %v292_v8 = vadd.f32 %v291_v7, %v1999_v6 }
 0x292   :  { %v322_v9 = vsel %vm321_vm11, %v292_v8, -inf }
 0x293   :  { %323 = vmax.xlane.f32.xlu2 %v322_v9 }
 0x29d   :  { %v318_v12 = vpop.f32.mrf.mxu2 }
 0x29e   :  { %v319_v13 = vadd.f32 %v318_v12, %v2003_v11  ;;  %v1602_v12 = vld [vmem:[#allocation7 + $0x43] ss:$0 sm:$0xff] }
 0x2a0   :  { %v325_v14 = vsel %vm321_vm11, %v319_v13, -inf }
 0x2a1   :  { %326 = vmax.xlane.f32.xlu0 %v325_v14 }
 0x2a7   :  { %v421_v15 = vpop.f32.mrf.mxu1 }
 0x2a8   :  { %v422_v16 = vadd.f32 %v421_v15, %v1999_v6 }
 0x2aa   :  { %v449_v17 = vpop.f32.mrf.mxu2  ;;  %v452_v18 = vsel %vm321_vm11, %v422_v16, -inf }
 0x2ab   :  { %v450_v19 = vadd.f32 %v449_v17, %v2003_v11  ;;  %453 = vmax.xlane.f32.xlu1 %v452_v18 }
 0x2ad   :  { %v455_v20 = vsel %vm321_vm11, %v450_v19, -inf }
 0x2ae   :  { %456 = vmax.xlane.f32.xlu2 %v455_v20 }
 0x2c4   :  { %1587 = vrot.lane.b32.xlu1 %v1586_v21, %s1748_s1 }
 0x306   :  { %v324_v22 = vpop.xlane.xlu2 %323 }
 0x307   :  { %v328_v23 = vsub.f32 %v292_v8, %v324_v22 }
 0x309   :  { %v330_v24 = vmul.f32 1.442695, %v328_v23 }
 0x30b   :  { %1617 = vpow2.f32 %v330_v24 }
 0x311   :  { %v1618_v25 = vpop.eup %1617 }
 0x312   :  { %v334_v26 = vsel %vm321_vm11, %v1618_v25, 0.0 }
 0x313   :  { %335 = vadd.xlane.f32.xlu0 %v334_v26 }
 0x314   :  { %v327_v27 = vpop.xlane.xlu0 %326 }
 0x315   :  { %v329_v28 = vsub.f32 %v319_v13, %v327_v27 }
 0x317   :  { %v332_v29 = vmul.f32 1.442695, %v329_v28 }
 0x319   :  { %1619 = vpow2.f32 %v332_v29 }
 0x31e   :  { %v454_v30 = vpop.xlane.xlu1 %453 }
 0x31f   :  { %v1620_v31 = vpop.eup %1619  ;;  %v458_v32 = vsub.f32 %v422_v16, %v454_v30  ;;  %v626_v30 = vld [vmem:[#allocation7 + $0x56] sm:$0xff] }
 0x320   :  { %v337_v33 = vsel %vm321_vm11, %v1620_v31, 0.0 }
 0x321   :  { %v460_v34 = vmul.f32 1.442695, %v458_v32  ;;  %v457_v35 = vpop.xlane.xlu2 %456  ;;  %338 = vadd.xlane.f32.xlu2 %v337_v33  ;;  %v624_v32 = vld [vmem:[#allocation7 + $0x46] sm:$0xff] }
 0x322   :  { %v459_v36 = vsub.f32 %v450_v19, %v457_v35 }
 0x323   :  { %1621 = vpow2.f32 %v460_v34 }
 0x324   :  { %v462_v37 = vmul.f32 1.442695, %v459_v36 }
 0x326   :  { %1623 = vpow2.f32 %v462_v37 }
 0x329   :  { %v1622_v38 = vpop.eup %1621 }
 0x32a   :  { %v464_v39 = vsel %vm321_vm11, %v1622_v38, 0.0 }
 0x32b   :  { %465 = vadd.xlane.f32.xlu0 %v464_v39 }
 0x32c   :  { %v1624_v40 = vpop.eup %1623 }
 0x32d   :  { %v467_v41 = vsel %vm321_vm11, %v1624_v40, 0.0 }
 0x333   :  { %468 = vadd.xlane.f32.xlu0 %v467_v41 }
 0x336   :  { %v1588_v42 = vpop.permute.xlu1 %1587 }
 0x337   :  { %v1589_v43 = vunpack.i.l.bf16 %v1588_v42  ;;  %v1590_v44 = vunpack.i.h.bf16 %v1588_v42 }
 0x339   :  { %365 = vmatpush.msra.mxu3 %v1589_v43  ;;  %474 = vrot.lane.b32.xlu2 %v1970_v57, %s1749_s21 }
 0x33b   :  { %391 = vmatpush.msrb.mxu3 %v1590_v44  ;;  %v573_v44 = vld [vmem:[#allocation7 + $0x44] sm:$0x3] }
 0x347   :  { %500 = vrot.lane.b32.xlu0 %v1978_v59, %s1749_s21 }
 0x386   :  { %v336_v45 = vpop.xlane.xlu0 %335 }
 0x387   :  { %1625 = vrcp.f32 %v336_v45 }
 0x38d   :  { %v1626_v46 = vpop.eup %1625 }
 0x38e   :  { %v342_v47 = vmul.f32 %v1626_v46, %v1618_v25 }
 0x390   :  { %1537 = vmatmul.msk.f32.vlgmr.msra.gmra.mxu3 %vm321_vm11, %v342_v47 }
 0x394   :  { %v339_v48 = vpop.xlane.xlu2 %338 }
 0x395   :  { %1627 = vrcp.f32 %v339_v48  ;;  %v618_v48 = vperm.slane %v573_v44, 0 }
 0x39b   :  { %v1628_v50 = vpop.eup %1627 }
 0x39c   :  { %v475_v51 = vpop.permute.xlu2 %474  ;;  %v343_v52 = vmul.f32 %v1628_v50, %v1620_v31  ;;  %v625_v31 = vld [vmem:[#allocation7 + $0x4e] sm:$0xff] }
 0x39d   :  { %495 = vmatpush.msra.mxu3 %v475_v51 }
 0x39e   :  { %1538 = vmatmul.msk.f32.vlgmr.msrb.gmra.mxu3 %vm321_vm11, %v343_v52  ;;  %v466_v53 = vpop.xlane.xlu0 %465 }
 0x39f   :  { %1629 = vrcp.f32 %v466_v53  ;;  %v621_v53 = vperm.slane %v573_v44, 1 }
 0x3a5   :  { %v1630_v55 = vpop.eup %1629 }
 0x3a6   :  { %v472_v56 = vmul.f32 %v1630_v55, %v1622_v38  ;;  %v469_v57 = vpop.xlane.xlu0 %468 }
 0x3a7   :  { %1631 = vrcp.f32 %v469_v57 }
 0x3a8   :  { %1543 = vmatmul.msk.f32.vlgmr.msra.gmra.mxu3 %vm321_vm11, %v472_v56 }
 0x3ad   :  { %v1632_v58 = vpop.eup %1631 }
 0x3ae   :  { %v473_v59 = vmul.f32 %v1632_v58, %v1624_v40 }
 0x3b9   :  { %v501_v60 = vpop.permute.xlu0 %500 }
 0x3ba   :  { %521 = vmatpush.msra.mxu1 %v501_v60 }
 0x3bb   :  { %1544 = vmatmul.msk.f32.vlgmr.msra.gmra.mxu1 %vm321_vm11, %v473_v59 }
 0x413   :  { %v367_v61 = vpop.f32.mrf.mxu3 }
 0x421   :  { %v393_v62 = vpop.f32.mrf.mxu3 }
 0x42b   :  { %v497_v63 = vpop.f32.mrf.mxu3 }
 0x42c   :  { %528 = vrot.lane.b32.xlu1 %v497_v63, %s1750_s22 }
 0x438   :  { %v523_v0 = vpop.f32.mrf.mxu1 }
 0x439   :  { %530 = vrot.lane.b32.xlu2 %v523_v0, %s1750_s22  ;;  %v684_v0 = vld [vmem:[#allocation7 + $0x9f] sm:$0xff] }
 0x43a   :  { %702 = vmatpush.msrb.mxu3 %v684_v0 }
 0x43c   :  { %703 = vmatpush.msrb.mxu3 %v683_v2 }
 0x43e   :  { %704 = vmatpush.msrb.mxu3 %v682_v3 }
 0x440   :  { %705 = vmatpush.msrb.mxu3 %v681_v4  ;;  %v719_v4 = vld [vmem:[#allocation7 + $0xa8] sm:$0x3] }
 0x442   :  { %706 = vmatpush.msrb.mxu3 %v680_v5 }
 0x493   :  { %v531_v9 = vpop.permute.xlu2 %530 }
 0x494   :  { %v535_v10 = vsel %vm269_vm9, %v393_v62, %v531_v9  ;;  %v677_v9 = vld [vmem:[#allocation7 + $0x67] sm:$0xff] }
 0x49e   :  { %v529_v7 = vpop.permute.xlu1 %528 }
 0x49f   :  { %v534_v8 = vsel %vm269_vm9, %v367_v61, %v529_v7  ;;  %v679_v7 = vld [vmem:[#allocation7 + $0x77] sm:$0xff] }
 0x4a0   :  { %1545 = vmatmul.msk.f32.vlgmr.msra.gmra.mxu2 %vm164_vm1, %v534_v8  ;;  %707 = vmatpush.msrb.mxu3 %v679_v7  ;;  %v678_v8 = vld [vmem:[#allocation7 + $0x6f] sm:$0xff] }
 0x4a2   :  { %708 = vmatpush.msrb.mxu3 %v678_v8 }
 0x4a4   :  { %709 = vmatpush.msrb.mxu3 %v677_v9 }
 0x4a8   :  { %1546 = vmatmul.msk.f32.gmra.mxu2 %vm164_vm1, %v535_v10  ;;  %v1603_v10 = vld [vmem:[#allocation7 + $0x66] ss:$0 sm:$0xff] }
 0x523   :  { %v565_v13 = vpop.f32.mrf.mxu2 }
 0x524   :  { %v566_v14 = vadd.f32 %v1602_v12, %v565_v13 }
 0x526   :  { %v571_v15 = vadd.f32 %v566_v14, %v1962_v49 }
 0x528   :  { %v574_v16 = vsel %vm164_vm1, %v571_v15, 0.0 }
 0x529   :  { %575 = vadd.xlane.f32.xlu1 %v574_v16 }
 0x52b   :  { %v568_v17 = vpop.f32.mrf.mxu2 }
 0x52c   :  { %v569_v18 = vadd.f32 %v1602_v12, %v568_v17 }
 0x52e   :  { %v572_v19 = vadd.f32 %v569_v18, %v1966_v54  ;;  %v627_v54 = vld [vmem:[#allocation7 + $0x5e] sm:$0xff] }
 0x52f   :  { %648 = vmatpush.msrb.mxu0 %v627_v54 }
 0x530   :  { %v577_v20 = vsel %vm164_vm1, %v572_v19, 0.0 }
 0x531   :  { %578 = vadd.xlane.f32.xlu2 %v577_v20  ;;  %649 = vmatpush.msrb.mxu0 %v626_v30 }
 0x533   :  { %650 = vmatpush.msrb.mxu0 %v625_v31 }
 0x535   :  { %651 = vmatpush.msrb.mxu0 %v624_v32  ;;  %v1604_v32 = vld [vmem:[#allocation7 + $0xa7] ss:$0 sm:$0xff] }
 0x59c   :  { %v576_v21 = vpop.xlane.xlu1 %575 }
 0x59d   :  { %v580_v22 = vmul.f32 %v576_v21, %v1954_v1 }
 0x59f   :  { %v582_v23 = vsub.f32 %v571_v15, %v580_v22 }
 0x5a1   :  { %v584_v24 = vmul.f32 %v582_v23, %v582_v23 }
 0x5a3   :  { %v586_v25 = vsel %vm164_vm1, %v584_v24, 0.0 }
 0x5a4   :  { %587 = vadd.xlane.f32.xlu0 %v586_v25  ;;  %v579_v26 = vpop.xlane.xlu2 %578 }
 0x5a5   :  { %v581_v49 = vmul.f32 %v579_v26, %v1954_v1 }
 0x5a7   :  { %v583_v27 = vsub.f32 %v572_v19, %v581_v49 }
 0x5a9   :  { %v585_v28 = vmul.f32 %v583_v27, %v583_v27 }
 0x5ab   :  { %v589_v29 = vsel %vm164_vm1, %v585_v28, 0.0 }
 0x5ac   :  { %590 = vadd.xlane.f32.xlu1 %v589_v29 }
 0x617   :  { %v588_v33 = vpop.xlane.xlu0 %587 }
 0x618   :  { %v592_v34 = vmul.f32 %v588_v33, %v1954_v1 }
 0x61a   :  { %v594_v35 = vadd.f32 1e-12, %v592_v34 }
 0x61c   :  { %1633 = vrsqrt.f32 %v594_v35  ;;  %vm602_vm13 = vweird.f32 %v594_v35 }
 0x61f   :  { %v591_v36 = vpop.xlane.xlu1 %590 }
 0x620   :  { %v593_v37 = vmul.f32 %v591_v36, %v1954_v1 }
 0x622   :  { %v1634_v38 = vpop.eup %1633  ;;  %v595_v39 = vadd.f32 1e-12, %v593_v37 }
 0x623   :  { %v597_v40 = vmul.f32 %v1634_v38, %v594_v35  ;;  %vm603_vm12 = vweird.f32 %v1634_v38 }
 0x624   :  { %1635 = vrsqrt.f32 %v595_v39  ;;  %vm604_vm14 = vmor %vm602_vm13, %vm603_vm12  ;;  %vm612_vm0 = vweird.f32 %v595_v39 }
 0x625   :  { %v598_v41 = vmul.f32 %v1634_v38, %v597_v40 }
 0x627   :  { %v599_v42 = vmul.f32 0.5, %v598_v41 }
 0x629   :  { %v600_v43 = vsub.f32 1.5, %v599_v42 }
 0x62a   :  { %v1636_v45 = vpop.eup %1635 }
 0x62b   :  { %v601_v46 = vmul.f32 %v1634_v38, %v600_v43  ;;  %v607_v47 = vmul.f32 %v1636_v45, %v595_v39  ;;  %vm613_vm15 = vweird.f32 %v1636_v45 }
 0x62c   :  { %vm614_vm2 = vmor %vm612_vm0, %vm613_vm15 }
 0x62d   :  { %v605_v50 = vsel %vm604_vm14, %v1634_v38, %v601_v46  ;;  %v608_v51 = vmul.f32 %v1636_v45, %v607_v47 }
 0x62e   :  { %v616_v52 = vmul.f32 %v605_v50, %v582_v23 }
 0x62f   :  { %v609_v55 = vmul.f32 0.5, %v608_v51 }
 0x630   :  { %v619_v56 = vmul.f32 %v618_v48, %v616_v52  ;;  %v773_v52 = vld [vmem:[#allocation7 + $0xc2] sm:$0xff] }
 0x631   :  { %v610_v57 = vsub.f32 1.5, %v609_v55  ;;  %794 = vmatpush.msrb.mxu2 %v773_v52  ;;  %v771_v55 = vld [vmem:[#allocation7 + $0xb2] sm:$0xff] }
 0x632   :  { %v622_v58 = vadd.f32 %v621_v53, %v619_v56  ;;  %v770_v56 = vld [vmem:[#allocation7 + $0xaa] sm:$0xff] }
 0x633   :  { %v611_v59 = vmul.f32 %v1636_v45, %v610_v57 }
 0x634   :  { %1547 = vmatmul.msk.f32.vlgmr.msrb.gmra.mxu0 %vm164_vm1, %v622_v58 }
 0x635   :  { %v615_v60 = vsel %vm614_vm2, %v1636_v45, %v611_v59 }
 0x636   :  { %v617_v61 = vmul.f32 %v615_v60, %v583_v27 }
 0x638   :  { %v620_v62 = vmul.f32 %v618_v48, %v617_v61 }
 0x63a   :  { %v623_v63 = vadd.f32 %v621_v53, %v620_v62  ;;  %v772_v53 = vld [vmem:[#allocation7 + $0xba] sm:$0xff] }
 0x63b   :  { %795 = vmatpush.msrb.mxu2 %v772_v53 }
 0x63c   :  { %1548 = vmatmul.msk.f32.gmra.mxu0 %vm164_vm1, %v623_v63 }
 0x63d   :  { %796 = vmatpush.msrb.mxu2 %v771_v55 }
 0x63f   :  { %797 = vmatpush.msrb.mxu2 %v770_v56 }
 0x6b1   :  { %v653_v12 = vpop.f32.mrf.mxu0 }
 0x6b2   :  { %v654_v13 = vadd.f32 %v1603_v10, %v653_v12 }
 0x6b4   :  { %v659_v14 = vmul.f32 %v654_v13, %v654_v13 }
 0x6b6   :  { %v661_v15 = vmul.f32 %v659_v14, %v654_v13 }
 0x6b8   :  { %v663_v16 = vmul.f32 0.044715, %v661_v15  ;;  %v767_v15 = vperm.slane %v719_v4, 1 }
 0x6b9   :  { %v656_v17 = vpop.f32.mrf.mxu0 }
 0x6ba   :  { %v665_v18 = vadd.f32 %v663_v16, %v654_v13  ;;  %v657_v19 = vadd.f32 %v1603_v10, %v656_v17  ;;  %v764_v10 = vperm.slane %v719_v4, 0 }
 0x6bc   :  { %v667_v20 = vmul.f32 0.7978846, %v665_v18  ;;  %v660_v21 = vmul.f32 %v657_v19, %v657_v19 }
 0x6be   :  { %1637 = vtanh.f32 %v667_v20  ;;  %v662_v22 = vmul.f32 %v660_v21, %v657_v19 }
 0x6c0   :  { %v664_v23 = vmul.f32 0.044715, %v662_v22 }
 0x6c2   :  { %v666_v24 = vadd.f32 %v664_v23, %v657_v19 }
 0x6c4   :  { %v1638_v25 = vpop.eup %1637  ;;  %v668_v26 = vmul.f32 0.7978846, %v666_v24 }
 0x6c5   :  { %v671_v49 = vadd.f32 1.0, %v1638_v25  ;;  %v1605_v25 = vld [vmem:[#allocation7 + $0xca] ss:$0 sm:$0xff] }
 0x6c6   :  { %1639 = vtanh.f32 %v668_v26 }
 0x6c7   :  { %v673_v27 = vmul.f32 0.5, %v671_v49 }
 0x6c9   :  { %v675_v28 = vmul.f32 %v673_v27, %v654_v13 }
 0x6cb   :  { %1549 = vmatmul.msk.f32.vlgmr.msrb.gmra.mxu3 %vm687_vm3, %v675_v28 }
 0x6cc   :  { %v1640_v29 = vpop.eup %1639 }
 0x6cd   :  { %v672_v54 = vadd.f32 1.0, %v1640_v29 }
 0x6cf   :  { %v674_v30 = vmul.f32 0.5, %v672_v54 }
 0x6d1   :  { %v676_v31 = vmul.f32 %v674_v30, %v657_v19 }
 0x6d3   :  { %1550 = vmatmul.msk.f32.gmra.mxu3 %vm687_vm3, %v676_v31 }
 0x74e   :  { %v711_v33 = vpop.f32.mrf.mxu3 }
 0x74f   :  { %v712_v34 = vadd.f32 %v1604_v32, %v711_v33 }
 0x751   :  { %v717_v35 = vadd.f32 %v712_v34, %v622_v58 }
 0x753   :  { %v720_v36 = vsel %vm164_vm1, %v717_v35, 0.0 }
 0x754   :  { %721 = vadd.xlane.f32.xlu2 %v720_v36 }
 0x756   :  { %v714_v37 = vpop.f32.mrf.mxu3 }
 0x757   :  { %v715_v38 = vadd.f32 %v1604_v32, %v714_v37 }
 0x759   :  { %v718_v39 = vadd.f32 %v715_v38, %v623_v63 }
 0x75b   :  { %v723_v40 = vsel %vm164_vm1, %v718_v39, 0.0 }
 0x75c   :  { %724 = vadd.xlane.f32.xlu0 %v723_v40 }
 0x7c7   :  { %v722_v41 = vpop.xlane.xlu2 %721 }
 0x7c8   :  { %v726_v42 = vmul.f32 %v722_v41, %v1954_v1 }
 0x7ca   :  { %v728_v43 = vsub.f32 %v717_v35, %v726_v42 }
 0x7cc   :  { %v730_v44 = vmul.f32 %v728_v43, %v728_v43 }
 0x7ce   :  { %v732_v45 = vsel %vm164_vm1, %v730_v44, 0.0 }
 0x7cf   :  { %v725_v46 = vpop.xlane.xlu0 %724  ;;  %733 = vadd.xlane.f32.xlu1 %v732_v45 }
 0x7d0   :  { %v727_v47 = vmul.f32 %v725_v46, %v1954_v1 }
 0x7d2   :  { %v729_v48 = vsub.f32 %v718_v39, %v727_v47 }
 0x7d4   :  { %v731_v50 = vmul.f32 %v729_v48, %v729_v48 }
 0x7d6   :  { %v735_v51 = vsel %vm164_vm1, %v731_v50, 0.0 }
 0x7d7   :  { %736 = vadd.xlane.f32.xlu2 %v735_v51 }
 0x842   :  { %v734_v57 = vpop.xlane.xlu1 %733 }
 0x843   :  { %v738_v58 = vmul.f32 %v734_v57, %v1954_v1 }
 0x845   :  { %v740_v59 = vadd.f32 1e-12, %v738_v58 }
 0x847   :  { %1641 = vrsqrt.f32 %v740_v59  ;;  %vm748_vm5 = vweird.f32 %v740_v59 }
 0x84a   :  { %v737_v60 = vpop.xlane.xlu2 %736 }
 0x84b   :  { %v739_v61 = vmul.f32 %v737_v60, %v1954_v1 }
 0x84d   :  { %v1642_v62 = vpop.eup %1641  ;;  %v741_v63 = vadd.f32 1e-12, %v739_v61 }
 0x84e   :  { %v743_v0 = vmul.f32 %v1642_v62, %v740_v59  ;;  %vm749_vm4 = vweird.f32 %v1642_v62 }
 0x84f   :  { %1643 = vrsqrt.f32 %v741_v63  ;;  %vm750_vm6 = vmor %vm748_vm5, %vm749_vm4  ;;  %vm758_vm8 = vweird.f32 %v741_v63 }
 0x850   :  { %v744_v2 = vmul.f32 %v1642_v62, %v743_v0 }
 0x852   :  { %v745_v3 = vmul.f32 0.5, %v744_v2 }
 0x854   :  { %v746_v5 = vsub.f32 1.5, %v745_v3 }
 0x855   :  { %v1644_v7 = vpop.eup %1643 }
 0x856   :  { %v747_v8 = vmul.f32 %v1642_v62, %v746_v5  ;;  %v753_v9 = vmul.f32 %v1644_v7, %v741_v63  ;;  %vm759_vm7 = vweird.f32 %v1644_v7 }
 0x857   :  { %vm760_vm10 = vmor %vm758_vm8, %vm759_vm7  ;;  %vm1319_vm7 = vcmask 1041409  }
 0x858   :  { %v751_v12 = vsel %vm750_vm6, %v1642_v62, %v747_v8  ;;  %v754_v13 = vmul.f32 %v1644_v7, %v753_v9 }
 0x859   :  { %v762_v14 = vmul.f32 %v751_v12, %v728_v43 }
 0x85a   :  { %v755_v16 = vmul.f32 0.5, %v754_v13 }
 0x85b   :  { %v765_v17 = vmul.f32 %v764_v10, %v762_v14 }
 0x85c   :  { %v756_v18 = vsub.f32 1.5, %v755_v16 }
 0x85d   :  { %v2054_v19 = vadd.f32 %v767_v15, %v765_v17 }
 0x85e   :  { %v757_v20 = vmul.f32 %v1644_v7, %v756_v18 }
 0x85f   :  { %1551 = vmatmul.msk.f32.vlgmr.msrb.gmra.mxu2 %vm164_vm1, %v2054_v19 }
 0x860   :  { %v761_v21 = vsel %vm760_vm10, %v1644_v7, %v757_v20 }
 0x861   :  { %v763_v22 = vmul.f32 %v761_v21, %v729_v48 }
 0x863   :  { %v766_v23 = vmul.f32 %v764_v10, %v763_v22 }
 0x865   :  { %v2058_v24 = vadd.f32 %v767_v15, %v766_v23 }
 0x867   :  { %1552 = vmatmul.msk.f32.gmra.mxu2 %vm164_vm1, %v2058_v24 }
 0x8e2   :  { %v799_v26 = vpop.f32.mrf.mxu2 }
 0x8e3   :  { %v2062_v49 = vadd.f32 %v1605_v25, %v799_v26  ;;  %v1076_v26 = vld [vmem:[#allocation7 + $0xe3] sm:$0xff] }
 0x8e5   :  { %806 = vrot.lane.b32.xlu0 %v2062_v49, %s1745_s23 }
 0x8ea   :  { %v802_v27 = vpop.f32.mrf.mxu2 }
 0x8eb   :  { %v2066_v28 = vadd.f32 %v1605_v25, %v802_v27  ;;  %v1074_v27 = vld [vmem:[#allocation7 + $0xd3] sm:$0xff] }
 0x8ed   :  { %961 = vrot.lane.b32.xlu0 %v2066_v28, %s1746_s19  ;;  %963 = vrot.lane.b32.xlu2 %v2066_v28, %s1744_s2  ;;  %v1591_v3 = vpack.i.bf16 %v2066_v28, %v2062_v49 }
 0x8ee   :  { %833 = vrot.lane.b32.xlu1 %v2066_v28, %s1745_s23 }
 0x8f5   :  { %933 = vrot.lane.b32.xlu0 %v2062_v49, %s1746_s19 }
 0x8f6   :  { %935 = vrot.lane.b32.xlu1 %v2062_v49, %s1744_s2 }
 0x947   :  { %v964_v29 = vpop.permute.xlu2 %963 }
 0x948   :  { %1561 = vmatpush.xpose.msk.msra.mxu3 %vm269_vm9, %v964_v29 }
 0x957   :  { %v807_v54 = vpop.permute.xlu0 %806 }
 0x958   :  { %1553 = vmatpush.xpose.msk.msra.mxu2 %vm269_vm9, %v807_v54 }
 0x95b   :  { %1554 = vmatmul.msk.f32.vlgmr.msra.gmra.mxu2 %vm269_vm9, %v2062_v49  ;;  %v1075_v49 = vld [vmem:[#allocation7 + $0xdb] sm:$0xff] }
 0x95f   :  { %v962_v30 = vpop.permute.xlu0 %961 }
 0x960   :  { %v834_v31 = vpop.permute.xlu1 %833  ;;  %1562 = vmatmul.msk.f32.vlgmr.msra.gmra.mxu3 %vm269_vm9, %v962_v30 }
 0x961   :  { %1555 = vmatpush.xpose.msk.msra.mxu0 %vm269_vm9, %v834_v31  ;;  %v1073_v31 = vld [vmem:[#allocation7 + $0xcb] sm:$0xff] }
 0x964   :  { %1556 = vmatmul.msk.f32.vlgmr.msra.gmra.mxu0 %vm269_vm9, %v2066_v28 }
 0x967   :  { %v934_v33 = vpop.permute.xlu0 %933 }
 0x968   :  { %v936_v32 = vpop.permute.xlu1 %935 }
 0x969   :  { %1559 = vmatpush.xpose.msk.msrb.mxu0 %vm269_vm9, %v936_v32 }
 0x96c   :  { %1560 = vmatmul.msk.f32.vlgmr.msrb.gmra.mxu0 %vm269_vm9, %v934_v33 }
 0x96d   :  { %1097 = vmatpush.msra.mxu0 %v1076_v26 }
 0x96f   :  { %1098 = vmatpush.msra.mxu0 %v1075_v49  ;;  %v1221_v49 = vld [vmem:[#allocation7 + $0x147] sm:$0xff] }
 0x971   :  { %1099 = vmatpush.msra.mxu0 %v1074_v27  ;;  %v1220_v27 = vld [vmem:[#allocation7 + $0x13f] sm:$0xff] }
 0x973   :  { %1100 = vmatpush.msra.mxu0 %v1073_v31  ;;  %v1215_v31 = vld [vmem:[#allocation7 + $0x117] sm:$0xff] }
 0x9de   :  { %v829_v34 = vpop.f32.mrf.mxu2 }
 0x9df   :  { %v830_v35 = vadd.f32 %v829_v34, %v1999_v6 }
 0x9e1   :  { %v856_v36 = vpop.f32.mrf.mxu0  ;;  %v859_v37 = vsel %vm321_vm11, %v830_v35, -inf }
 0x9e2   :  { %v857_v38 = vadd.f32 %v856_v36, %v2003_v11  ;;  %860 = vmax.xlane.f32.xlu2 %v859_v37  ;;  %v1606_v36 = vld [vmem:[#allocation7 + $0xeb] ss:$0 sm:$0xff] }
 0x9e3   :  { %v986_v39 = vpop.f32.mrf.mxu3 }
 0x9e4   :  { %v862_v40 = vsel %vm321_vm11, %v857_v38, -inf  ;;  %v987_v41 = vadd.f32 %v986_v39, %v2003_v11 }
 0x9e5   :  { %863 = vmax.xlane.f32.xlu1 %v862_v40 }
 0x9e6   :  { %v992_v43 = vsel %vm321_vm11, %v987_v41, -inf }
 0x9e9   :  { %v958_v42 = vpop.f32.mrf.mxu0 }
 0x9ea   :  { %v959_v44 = vadd.f32 %v958_v42, %v1999_v6  ;;  %993 = vmax.xlane.f32.xlu2 %v992_v43 }
 0x9ec   :  { %v989_v45 = vsel %vm321_vm11, %v959_v44, -inf }
 0x9ed   :  { %990 = vmax.xlane.f32.xlu0 %v989_v45 }
 0xa55   :  { %v861_v46 = vpop.xlane.xlu2 %860 }
 0xa56   :  { %v865_v47 = vsub.f32 %v830_v35, %v861_v46 }
 0xa58   :  { %v867_v48 = vmul.f32 1.442695, %v865_v47  ;;  %v864_v50 = vpop.xlane.xlu1 %863 }
 0xa59   :  { %v866_v51 = vsub.f32 %v857_v38, %v864_v50 }
 0xa5a   :  { %1645 = vpow2.f32 %v867_v48 }
 0xa5b   :  { %v869_v52 = vmul.f32 1.442695, %v866_v51 }
 0xa5d   :  { %1647 = vpow2.f32 %v869_v52  ;;  %v994_v53 = vpop.xlane.xlu2 %993 }
 0xa5e   :  { %v996_v11 = vsub.f32 %v987_v41, %v994_v53 }
 0xa60   :  { %v1646_v55 = vpop.eup %1645  ;;  %v999_v56 = vmul.f32 1.442695, %v996_v11  ;;  %v991_v57 = vpop.xlane.xlu0 %990 }
 0xa61   :  { %v995_v58 = vsub.f32 %v959_v44, %v991_v57  ;;  %v871_v6 = vsel %vm321_vm11, %v1646_v55, 0.0  ;;  %v1161_v57 = vld [vmem:[#allocation7 + $0xee] sm:$0xff] }
 0xa62   :  { %872 = vadd.xlane.f32.xlu1 %v871_v6  ;;  %1649 = vpow2.f32 %v999_v56  ;;  %v1162_v56 = vld [vmem:[#allocation7 + $0xf6] sm:$0xff] }
 0xa63   :  { %v1648_v59 = vpop.eup %1647  ;;  %v997_v60 = vmul.f32 1.442695, %v995_v58 }
 0xa64   :  { %v874_v61 = vsel %vm321_vm11, %v1648_v59, 0.0 }
 0xa65   :  { %1651 = vpow2.f32 %v997_v60  ;;  %875 = vadd.xlane.f32.xlu0 %v874_v61 }
 0xa68   :  { %v1650_v62 = vpop.eup %1649 }
 0xa69   :  { %v1004_v2 = vsel %vm321_vm11, %v1650_v62, 0.0 }
 0xa6b   :  { %v1652_v63 = vpop.eup %1651 }
 0xa6c   :  { %v1001_v0 = vsel %vm321_vm11, %v1652_v63, 0.0 }
 0xa6d   :  { %1002 = vadd.xlane.f32.xlu2 %v1001_v0  ;;  %1005 = vadd.xlane.f32.xlu0 %v1004_v2 }
 0xa7b   :  { %1592 = vrot.lane.b32.xlu1 %v1591_v3, %s1748_s1 }
 0xa85   :  { %1597 = vrot.lane.b32.xlu2 %v1591_v3, %s1749_s21 }
 0xad5   :  { %v873_v5 = vpop.xlane.xlu1 %872 }
 0xad6   :  { %1653 = vrcp.f32 %v873_v5 }
 0xad8   :  { %v876_v4 = vpop.xlane.xlu0 %875 }
 0xad9   :  { %1655 = vrcp.f32 %v876_v4  ;;  %v1110_v4 = vld [vmem:[#allocation7 + $0xec] sm:$0x3] }
 0xadc   :  { %v1654_v8 = vpop.eup %1653 }
 0xadd   :  { %v879_v16 = vmul.f32 %v1654_v8, %v1646_v55  ;;  %v1163_v55 = vld [vmem:[#allocation7 + $0xfe] sm:$0xff] }
 0xadf   :  { %v1656_v10 = vpop.eup %1655 }
 0xae0   :  { %v1003_v7 = vpop.xlane.xlu2 %1002  ;;  %v1006_v9 = vpop.xlane.xlu0 %1005  ;;  %v880_v17 = vmul.f32 %v1656_v10, %v1648_v59  ;;  %v1155_v10 = vperm.slane %v1110_v4, 0 }
 0xae1   :  { %1657 = vrcp.f32 %v1003_v7 }
 0xae2   :  { %1659 = vrcp.f32 %v1006_v9 }
 0xae7   :  { %v1658_v21 = vpop.eup %1657 }
 0xae8   :  { %v1598_v12 = vpop.permute.xlu2 %1597  ;;  %v1660_v22 = vpop.eup %1659  ;;  %v1009_v23 = vmul.f32 %v1658_v21, %v1652_v63 }
 0xae9   :  { %v1600_v18 = vunpack.i.h.bf16 %v1598_v12  ;;  %v1599_v20 = vunpack.i.l.bf16 %v1598_v12  ;;  %v1010_v25 = vmul.f32 %v1660_v22, %v1650_v62 }
 0xaed   :  { %v1593_v13 = vpop.permute.xlu1 %1592 }
 0xaee   :  { %v1595_v14 = vunpack.i.h.bf16 %v1593_v13  ;;  %v1594_v15 = vunpack.i.l.bf16 %v1593_v13 }
 0xaf0   :  { %902 = vmatpush.msrb.mxu1 %v1594_v15  ;;  %928 = vmatpush.msrb.mxu2 %v1595_v14  ;;  %v1158_v15 = vperm.slane %v1110_v4, 1 }
 0xaf1   :  { %1557 = vmatmul.msk.f32.vlgmr.msrb.gmra.mxu1 %vm321_vm11, %v879_v16  ;;  %1558 = vmatmul.msk.f32.vlgmr.msrb.gmra.mxu2 %vm321_vm11, %v880_v17 }
 0xaf2   :  { %1032 = vmatpush.msra.mxu1 %v1599_v20  ;;  %1058 = vmatpush.msra.mxu2 %v1600_v18 }
 0xaf4   :  { %1238 = vmatpush.msrb.mxu1 %v1221_v49 }
 0xaf6   :  { %1239 = vmatpush.msrb.mxu1 %v1220_v27 }
 0xaf9   :  { %1563 = vmatmul.msk.f32.vlgmr.msra.gmra.mxu1 %vm321_vm11, %v1009_v23  ;;  %1564 = vmatmul.msk.f32.vlgmr.msra.gmra.mxu2 %vm321_vm11, %v1010_v25 }
 0xb6e   :  { %v904_v28 = vpop.f32.mrf.mxu1 }
 0xb74   :  { %v930_v29 = vpop.f32.mrf.mxu2 }
 0xb76   :  { %v1034_v54 = vpop.f32.mrf.mxu1 }
 0xb77   :  { %1065 = vrot.lane.b32.xlu0 %v1034_v54, %s1750_s22  ;;  %v1217_v54 = vld [vmem:[#allocation7 + $0x127] sm:$0xff] }
 0xb7c   :  { %v1060_v30 = vpop.f32.mrf.mxu2 }
 0xb7d   :  { %1067 = vrot.lane.b32.xlu1 %v1060_v30, %s1750_s22  ;;  %v1216_v30 = vld [vmem:[#allocation7 + $0x11f] sm:$0xff] }
 0xbe9   :  { %v1066_v32 = vpop.permute.xlu0 %1065 }
 0xbea   :  { %v1071_v33 = vsel %vm269_vm9, %v904_v28, %v1066_v32  ;;  %v1219_v28 = vld [vmem:[#allocation7 + $0x137] sm:$0xff]  ;;  %v1214_v32 = vld [vmem:[#allocation7 + $0x10f] sm:$0xff] }
 0xbeb   :  { %1565 = vmatmul.msk.f32.vlgmr.msra.gmra.mxu0 %vm164_vm1, %v1071_v33  ;;  %1240 = vmatpush.msrb.mxu1 %v1219_v28  ;;  %v1607_v33 = vld [vmem:[#allocation7 + $0x10e] ss:$0 sm:$0xff]  ;;  %v1310_v28 = vld [vmem:[#allocation7 + $0x172] sm:$0xff] }
 0xbef   :  { %v1068_v34 = vpop.permute.xlu1 %1067 }
 0xbf0   :  { %v1072_v35 = vsel %vm269_vm9, %v930_v29, %v1068_v34  ;;  %v1218_v29 = vld [vmem:[#allocation7 + $0x12f] sm:$0xff] }
 0xbf1   :  { %1241 = vmatpush.msrb.mxu1 %v1218_v29 }
 0xbf3   :  { %1566 = vmatmul.msk.f32.gmra.mxu0 %vm164_vm1, %v1072_v35  ;;  %1242 = vmatpush.msrb.mxu1 %v1217_v54 }
 0xbf5   :  { %1243 = vmatpush.msrb.mxu1 %v1216_v30  ;;  %v1381_v30 = vld [vmem:[#allocation7 + $0x20c] sm:$0xff] }
 0xbf7   :  { %1244 = vmatpush.msrb.mxu1 %v1215_v31  ;;  %v1380_v31 = vld [vmem:[#allocation7 + $0x204] sm:$0xff] }
 0xbf9   :  { %1245 = vmatpush.msrb.mxu1 %v1214_v32  ;;  %v1397_v32 = vld [vmem:[#allocation7 + $0x28c] sm:$0xff] }
 0xbfa   :  { %1398 = vmatpush.msrb.mxu0 %v1397_v32  ;;  %v1447_v32 = vld [vmem:[#allocation7 + $0x2bd] sm:$0xff] }
 0xc68   :  { %v1102_v37 = vpop.f32.mrf.mxu0 }
 0xc69   :  { %v1103_v38 = vadd.f32 %v1606_v36, %v1102_v37 }
 0xc6b   :  { %v1108_v39 = vadd.f32 %v1103_v38, %v2054_v19 }
 0xc6d   :  { %v1111_v40 = vsel %vm164_vm1, %v1108_v39, 0.0 }
 0xc6e   :  { %1112 = vadd.xlane.f32.xlu2 %v1111_v40 }
 0xc70   :  { %v1105_v41 = vpop.f32.mrf.mxu0 }
 0xc71   :  { %v1106_v42 = vadd.f32 %v1606_v36, %v1105_v41 }
 0xc73   :  { %v1109_v43 = vadd.f32 %v1106_v42, %v2058_v24  ;;  %v1164_v24 = vld [vmem:[#allocation7 + $0x106] sm:$0xff] }
 0xc74   :  { %1185 = vmatpush.msrb.mxu3 %v1164_v24 }
 0xc75   :  { %v1114_v44 = vsel %vm164_vm1, %v1109_v43, 0.0 }
 0xc76   :  { %1115 = vadd.xlane.f32.xlu0 %v1114_v44  ;;  %1186 = vmatpush.msrb.mxu3 %v1163_v55  ;;  %v1608_v55 = vld [vmem:[#allocation7 + $0x14f] ss:$0 sm:$0xff] }
 0xc78   :  { %1187 = vmatpush.msrb.mxu3 %v1162_v56 }
 0xc7a   :  { %1188 = vmatpush.msrb.mxu3 %v1161_v57 }
 0xc7c   :  { %1418 = vmatpush.msra.mxu3 %v1381_v30 }
 0xc7e   :  { %1419 = vmatpush.msra.mxu3 %v1380_v31  ;;  %v1448_v31 = vld [vmem:[#allocation7 + $0x2c5] sm:$0xff] }
 0xce1   :  { %v1113_v45 = vpop.xlane.xlu2 %1112 }
 0xce2   :  { %v1117_v46 = vmul.f32 %v1113_v45, %v1954_v1 }
 0xce4   :  { %v1119_v47 = vsub.f32 %v1108_v39, %v1117_v46 }
 0xce6   :  { %v1121_v48 = vmul.f32 %v1119_v47, %v1119_v47 }
 0xce8   :  { %v1123_v50 = vsel %vm164_vm1, %v1121_v48, 0.0 }
 0xce9   :  { %v1116_v51 = vpop.xlane.xlu0 %1115  ;;  %1124 = vadd.xlane.f32.xlu1 %v1123_v50 }
 0xcea   :  { %v1118_v19 = vmul.f32 %v1116_v51, %v1954_v1 }
 0xcec   :  { %v1120_v52 = vsub.f32 %v1109_v43, %v1118_v19 }
 0xcee   :  { %v1122_v53 = vmul.f32 %v1120_v52, %v1120_v52 }
 0xcf0   :  { %v1126_v11 = vsel %vm164_vm1, %v1122_v53, 0.0 }
 0xcf1   :  { %1127 = vadd.xlane.f32.xlu2 %v1126_v11 }
 0xd5c   :  { %v1125_v58 = vpop.xlane.xlu1 %1124 }
 0xd5d   :  { %v1129_v6 = vmul.f32 %v1125_v58, %v1954_v1 }
 0xd5f   :  { %v1131_v59 = vadd.f32 1e-12, %v1129_v6 }
 0xd61   :  { %1661 = vrsqrt.f32 %v1131_v59  ;;  %vm1139_vm11 = vweird.f32 %v1131_v59 }
 0xd64   :  { %v1128_v60 = vpop.xlane.xlu2 %1127 }
 0xd65   :  { %v1130_v61 = vmul.f32 %v1128_v60, %v1954_v1 }
 0xd67   :  { %v1662_v62 = vpop.eup %1661  ;;  %v1132_v63 = vadd.f32 1e-12, %v1130_v61 }
 0xd68   :  { %v1134_v0 = vmul.f32 %v1662_v62, %v1131_v59  ;;  %vm1140_vm9 = vweird.f32 %v1662_v62 }
 0xd69   :  { %1663 = vrsqrt.f32 %v1132_v63  ;;  %vm1141_vm12 = vmor %vm1139_vm11, %vm1140_vm9  ;;  %vm1149_vm14 = vweird.f32 %v1132_v63 }
 0xd6a   :  { %v1135_v2 = vmul.f32 %v1662_v62, %v1134_v0 }
 0xd6c   :  { %v1136_v3 = vmul.f32 0.5, %v1135_v2 }
 0xd6e   :  { %v1137_v5 = vsub.f32 1.5, %v1136_v3 }
 0xd6f   :  { %v1664_v7 = vpop.eup %1663 }
 0xd70   :  { %v1138_v8 = vmul.f32 %v1662_v62, %v1137_v5  ;;  %v1144_v9 = vmul.f32 %v1664_v7, %v1132_v63  ;;  %vm1150_vm13 = vweird.f32 %v1664_v7 }
 0xd71   :  { %vm1151_vm15 = vmor %vm1149_vm14, %vm1150_vm13 }
 0xd72   :  { %v1142_v12 = vsel %vm1141_vm12, %v1662_v62, %v1138_v8  ;;  %v1145_v13 = vmul.f32 %v1664_v7, %v1144_v9 }
 0xd73   :  { %v1153_v14 = vmul.f32 %v1142_v12, %v1119_v47 }
 0xd74   :  { %v1146_v16 = vmul.f32 0.5, %v1145_v13 }
 0xd75   :  { %v1156_v17 = vmul.f32 %v1155_v10, %v1153_v14  ;;  %v1309_v14 = vld [vmem:[#allocation7 + $0x16a] sm:$0xff] }
 0xd76   :  { %v1147_v18 = vsub.f32 1.5, %v1146_v16  ;;  %1335 = vmatpush.msrb.mxu2 %v1309_v14  ;;  %v1386_v14 = vld [vmem:[#allocation7 + $0x234] sm:$0xff] }
 0xd77   :  { %v1159_v20 = vadd.f32 %v1158_v15, %v1156_v17  ;;  %v1307_v17 = vld [vmem:[#allocation7 + $0x15a] sm:$0xff] }
 0xd78   :  { %v1148_v21 = vmul.f32 %v1664_v7, %v1147_v18  ;;  %v1306_v18 = vld [vmem:[#allocation7 + $0x152] sm:$0xff] }
 0xd79   :  { %1567 = vmatmul.msk.f32.vlgmr.msrb.gmra.mxu3 %vm164_vm1, %v1159_v20 }
 0xd7a   :  { %v1152_v22 = vsel %vm1151_vm15, %v1664_v7, %v1148_v21  ;;  %v1313_v21 = vld [vmem:[#allocation7 + $0x18a] sm:$0xff] }
 0xd7b   :  { %v1154_v23 = vmul.f32 %v1152_v22, %v1120_v52  ;;  %v1312_v22 = vld [vmem:[#allocation7 + $0x182] sm:$0xff] }
 0xd7d   :  { %v1157_v25 = vmul.f32 %v1155_v10, %v1154_v23 }
 0xd7f   :  { %v1160_v26 = vadd.f32 %v1158_v15, %v1157_v25  ;;  %v1308_v15 = vld [vmem:[#allocation7 + $0x162] sm:$0xff]  ;;  %v1311_v25 = vld [vmem:[#allocation7 + $0x17a] sm:$0xff] }
 0xd80   :  { %1336 = vmatpush.msrb.mxu2 %v1308_v15  ;;  %v1366_v15 = vld [vmem:[#allocation7 + $0x194] sm:$0xff] }
 0xd81   :  { %1568 = vmatmul.msk.f32.gmra.mxu3 %vm164_vm1, %v1160_v26 }
 0xd82   :  { %1337 = vmatpush.msrb.mxu2 %v1307_v17  ;;  %v1384_v17 = vld [vmem:[#allocation7 + $0x224] sm:$0xff] }
 0xd84   :  { %1338 = vmatpush.msrb.mxu2 %v1306_v18  ;;  %v1383_v18 = vld [vmem:[#allocation7 + $0x21c] sm:$0xff] }
 0xd86   :  { %1357 = vmatpush.msra.mxu2 %v1313_v21  ;;  %v1457_v21 = vld [vmem:[#allocation7 + $0x30d] sm:$0xff] }
 0xd87   :  { %1460 = vmatpush.msra.mxu1 %v1457_v21 }
 0xd88   :  { %1358 = vmatpush.msra.mxu2 %v1312_v22  ;;  %v1456_v22 = vld [vmem:[#allocation7 + $0x305] sm:$0xff] }
 0xd89   :  { %1461 = vmatpush.msra.mxu1 %v1456_v22 }
 0xd8a   :  { %1359 = vmatpush.msra.mxu2 %v1311_v25  ;;  %v1454_v25 = vld [vmem:[#allocation7 + $0x2f5] sm:$0xff] }
 0xd8c   :  { %1360 = vmatpush.msra.mxu2 %v1310_v28  ;;  %v1450_v28 = vld [vmem:[#allocation7 + $0x2d5] sm:$0xff] }
 0xdfc   :  { %v1190_v34 = vpop.f32.mrf.mxu3 }
 0xdfd   :  { %v1191_v35 = vadd.f32 %v1607_v33, %v1190_v34  ;;  %v1379_v34 = vld [vmem:[#allocation7 + $0x1fc] sm:$0xff] }
 0xdfe   :  { %1420 = vmatpush.msra.mxu3 %v1379_v34 }
 0xdff   :  { %v1196_v36 = vmul.f32 %v1191_v35, %v1191_v35 }
 0xe01   :  { %v1198_v37 = vmul.f32 %v1196_v36, %v1191_v35  ;;  %v1395_v36 = vld [vmem:[#allocation7 + $0x27c] sm:$0xff] }
 0xe03   :  { %v1200_v38 = vmul.f32 0.044715, %v1198_v37 }
 0xe04   :  { %v1193_v39 = vpop.f32.mrf.mxu3 }
 0xe05   :  { %v1202_v40 = vadd.f32 %v1200_v38, %v1191_v35  ;;  %v1194_v41 = vadd.f32 %v1607_v33, %v1193_v39  ;;  %v1378_v38 = vld [vmem:[#allocation7 + $0x1f4] sm:$0xff] }
 0xe06   :  { %v1394_v39 = vld [vmem:[#allocation7 + $0x274] sm:$0xff]  ;;  %1421 = vmatpush.msra.mxu3 %v1378_v38 }
 0xe07   :  { %v1204_v42 = vmul.f32 0.7978846, %v1202_v40  ;;  %v1197_v43 = vmul.f32 %v1194_v41, %v1194_v41 }
 0xe09   :  { %1665 = vtanh.f32 %v1204_v42  ;;  %v1199_v44 = vmul.f32 %v1197_v43, %v1194_v41  ;;  %v1377_v42 = vld [vmem:[#allocation7 + $0x1ec] sm:$0xff] }
 0xe0a   :  { %v1393_v43 = vld [vmem:[#allocation7 + $0x26c] sm:$0xff]  ;;  %1422 = vmatpush.msra.mxu3 %v1377_v42  ;;  %v1443_v42 = vld [vmem:[#allocation7 + $0x29d] sm:$0xff] }
 0xe0b   :  { %v1201_v45 = vmul.f32 0.044715, %v1199_v44 }
 0xe0d   :  { %v1203_v46 = vadd.f32 %v1201_v45, %v1194_v41  ;;  %v1376_v45 = vld [vmem:[#allocation7 + $0x1e4] sm:$0xff] }
 0xe0e   :  { %1423 = vmatpush.msra.mxu3 %v1376_v45 }
 0xe0f   :  { %v1666_v47 = vpop.eup %1665  ;;  %v1205_v48 = vmul.f32 0.7978846, %v1203_v46 }
 0xe10   :  { %v1208_v50 = vadd.f32 1.0, %v1666_v47  ;;  %v1392_v47 = vld [vmem:[#allocation7 + $0x264] sm:$0xff] }
 0xe11   :  { %1667 = vtanh.f32 %v1205_v48  ;;  %v1255_v48 = vld [vmem:[#allocation7 + $0x150] sm:$0x3] }
 0xe12   :  { %v1210_v51 = vmul.f32 0.5, %v1208_v50 }
 0xe14   :  { %v1212_v19 = vmul.f32 %v1210_v51, %v1191_v35 }
 0xe16   :  { %1569 = vmatmul.msk.f32.vlgmr.msrb.gmra.mxu1 %vm687_vm3, %v1212_v19  ;;  %v1375_v19 = vld [vmem:[#allocation7 + $0x1dc] sm:$0xff] }
 0xe17   :  { %v1668_v52 = vpop.eup %1667  ;;  %1424 = vmatpush.msra.mxu3 %v1375_v19 }
 0xe18   :  { %v1209_v53 = vadd.f32 1.0, %v1668_v52  ;;  %v1391_v52 = vld [vmem:[#allocation7 + $0x25c] sm:$0xff] }
 0xe1a   :  { %v1211_v11 = vmul.f32 0.5, %v1209_v53 }
 0xe1c   :  { %v1213_v24 = vmul.f32 %v1211_v11, %v1194_v41  ;;  %v1374_v11 = vld [vmem:[#allocation7 + $0x1d4] sm:$0xff] }
 0xe1d   :  { %1425 = vmatpush.msra.mxu3 %v1374_v11 }
 0xe1e   :  { %1570 = vmatmul.msk.f32.gmra.mxu1 %vm687_vm3, %v1213_v24  ;;  %v1300_v24 = vperm.slane %v1255_v48, 0 }
 0xe93   :  { %v1247_v56 = vpop.f32.mrf.mxu1 }
 0xe94   :  { %v1248_v57 = vadd.f32 %v1608_v55, %v1247_v56  ;;  %v1390_v56 = vld [vmem:[#allocation7 + $0x254] sm:$0xff] }
 0xe96   :  { %v1253_v58 = vadd.f32 %v1248_v57, %v1159_v20 }
 0xe98   :  { %v1256_v6 = vsel %vm164_vm1, %v1253_v58, 0.0 }
 0xe99   :  { %1257 = vadd.xlane.f32.xlu1 %v1256_v6 }
 0xe9b   :  { %v1250_v59 = vpop.f32.mrf.mxu1 }
 0xe9c   :  { %v1251_v60 = vadd.f32 %v1608_v55, %v1250_v59  ;;  %v1389_v59 = vld [vmem:[#allocation7 + $0x24c] sm:$0xff] }
 0xe9e   :  { %v1254_v61 = vadd.f32 %v1251_v60, %v1160_v26  ;;  %v1372_v60 = vld [vmem:[#allocation7 + $0x1c4] sm:$0xff] }
 0xea0   :  { %v1259_v62 = vsel %vm164_vm1, %v1254_v61, 0.0 }
 0xea1   :  { %1260 = vadd.xlane.f32.xlu0 %v1259_v62 }
 0xf0c   :  { %v1258_v63 = vpop.xlane.xlu1 %1257 }
 0xf0d   :  { %v1262_v0 = vmul.f32 %v1258_v63, %v1954_v1  ;;  %v1303_v63 = vperm.slane %v1255_v48, 1 }
 0xf0f   :  { %v2131_v2 = vsub.f32 %v1253_v58, %v1262_v0  ;;  %v1373_v58 = vld [vmem:[#allocation7 + $0x1cc] sm:$0xff]  ;;  %v1371_v0 = vld [vmem:[#allocation7 + $0x1bc] sm:$0xff] }
 0xf10   :  { %1426 = vmatpush.msra.mxu3 %v1373_v58 }
 0xf11   :  { %v1266_v3 = vmul.f32 %v2131_v2, %v2131_v2 }
 0xf12   :  { %1427 = vmatpush.msra.mxu3 %v1372_v60 }
 0xf13   :  { %v1268_v4 = vsel %vm164_vm1, %v1266_v3, 0.0 }
 0xf14   :  { %1269 = vadd.xlane.f32.xlu0 %v1268_v4  ;;  %v1261_v5 = vpop.xlane.xlu0 %1260  ;;  %1428 = vmatpush.msra.mxu3 %v1371_v0 }
 0xf15   :  { %v1263_v7 = vmul.f32 %v1261_v5, %v1954_v1 }
 0xf17   :  { %v2137_v8 = vsub.f32 %v1254_v61, %v1263_v7  ;;  %v1369_v7 = vld [vmem:[#allocation7 + $0x1ac] sm:$0xff] }
 0xf19   :  { %v1267_v9 = vmul.f32 %v2137_v8, %v2137_v8 }
 0xf1b   :  { %v1271_v10 = vsel %vm164_vm1, %v1267_v9, 0.0 }
 0xf1c   :  { %1272 = vadd.xlane.f32.xlu2 %v1271_v10  ;;  %v1368_v10 = vld [vmem:[#allocation7 + $0x1a4] sm:$0xff] }
 0xf87   :  { %v1270_v12 = vpop.xlane.xlu0 %1269 }
 0xf88   :  { %v1274_v13 = vmul.f32 %v1270_v12, %v1954_v1  ;;  %v1387_v12 = vld [vmem:[#allocation7 + $0x23c] sm:$0xff] }
 0xf8a   :  { %v1276_v16 = vadd.f32 1e-12, %v1274_v13  ;;  %v1367_v13 = vld [vmem:[#allocation7 + $0x19c] sm:$0xff] }
 0xf8c   :  { %1669 = vrsqrt.f32 %v1276_v16  ;;  %vm1284_vm2 = vweird.f32 %v1276_v16 }
 0xf8f   :  { %v1273_v20 = vpop.xlane.xlu2 %1272 }
 0xf90   :  { %v1275_v23 = vmul.f32 %v1273_v20, %v1954_v1  ;;  %v1396_v1 = vld [vmem:[#allocation7 + $0x284] sm:$0xff]  ;;  %v1382_v20 = vld [vmem:[#allocation7 + $0x214] sm:$0xff] }
 0xf91   :  { %1399 = vmatpush.msrb.mxu0 %v1396_v1 }
 0xf92   :  { %v1670_v26 = vpop.eup %1669  ;;  %v1277_v49 = vadd.f32 1e-12, %v1275_v23  ;;  %v1455_v23 = vld [vmem:[#allocation7 + $0x2fd] sm:$0xff] }
 0xf93   :  { %v1279_v27 = vmul.f32 %v1670_v26, %v1276_v16  ;;  %vm1285_vm0 = vweird.f32 %v1670_v26  ;;  %1400 = vmatpush.msrb.mxu0 %v1395_v36  ;;  %v1385_v16 = vld [vmem:[#allocation7 + $0x22c] sm:$0xff]  ;;  %1462 = vmatpush.msra.mxu1 %v1455_v23 }
 0xf94   :  { %1671 = vrsqrt.f32 %v1277_v49  ;;  %vm2144_vm3 = vmor %vm1284_vm2, %vm1285_vm0  ;;  %vm1294_vm5 = vweird.f32 %v1277_v49 }
 0xf95   :  { %v1280_v29 = vmul.f32 %v1670_v26, %v1279_v27  ;;  %1401 = vmatpush.msrb.mxu0 %v1394_v39  ;;  %1463 = vmatpush.msra.mxu1 %v1454_v25  ;;  %v1451_v27 = vld [vmem:[#allocation7 + $0x2dd] sm:$0xff]  ;;  %v1446_v39 = vld [vmem:[#allocation7 + $0x2b5] sm:$0xff] }
 0xf97   :  { %v1281_v54 = vmul.f32 0.5, %v1280_v29  ;;  %1402 = vmatpush.msrb.mxu0 %v1393_v43  ;;  %v1314_v29 = vld [vmem:[#allocation7 + $0x192] sm:$0x3]  ;;  %v1442_v43 = vld [vmem:[#allocation7 + $0x295] sm:$0xff] }
 0xf98   :  { %v1315_v30 = vperm.slane %v1314_v29, 0 }
 0xf99   :  { %v1282_v33 = vsub.f32 1.5, %v1281_v54  ;;  %1403 = vmatpush.msrb.mxu0 %v1392_v47  ;;  %v1449_v54 = vld [vmem:[#allocation7 + $0x2cd] sm:$0xff] }
 0xf9a   :  { %v1672_v35 = vpop.eup %1671 }
 0xf9b   :  { %v1289_v37 = vmul.f32 %v1672_v35, %v1277_v49  ;;  %v1283_v40 = vmul.f32 %v1670_v26, %v1282_v33  ;;  %vm1295_vm4 = vweird.f32 %v1672_v35  ;;  %1404 = vmatpush.msrb.mxu0 %v1391_v52  ;;  %v1452_v49 = vld [vmem:[#allocation7 + $0x2e5] sm:$0xff] }
 0xf9c   :  { %vm1296_vm6 = vmor %vm1294_vm5, %vm1295_vm4 }
 0xf9d   :  { %v1290_v41 = vmul.f32 %v1672_v35, %v1289_v37  ;;  %v1287_v50 = vsel %vm2144_vm3, %v1670_v26, %v1283_v40  ;;  %1405 = vmatpush.msrb.mxu0 %v1390_v56  ;;  %v1453_v26 = vld [vmem:[#allocation7 + $0x2ed] sm:$0xff] }
 0xf9e   :  { %v1298_v55 = vmul.f32 %v1287_v50, %v2131_v2  ;;  %v1370_v2 = vld [vmem:[#allocation7 + $0x1b4] sm:$0xff]  ;;  %1464 = vmatpush.msra.mxu1 %v1453_v26 }
 0xf9f   :  { %v1291_v44 = vmul.f32 0.5, %v1290_v41  ;;  %1406 = vmatpush.msrb.mxu0 %v1389_v59  ;;  %1429 = vmatpush.msra.mxu3 %v1370_v2  ;;  %v1445_v40 = vld [vmem:[#allocation7 + $0x2ad] sm:$0xff]  ;;  %v1444_v41 = vld [vmem:[#allocation7 + $0x2a5] sm:$0xff] }
 0xfa0   :  { %v1301_v61 = vmul.f32 %v1300_v24, %v1298_v55  ;;  %1465 = vmatpush.msra.mxu1 %v1452_v49 }
 0xfa1   :  { %v1292_v51 = vsub.f32 1.5, %v1291_v44  ;;  %1430 = vmatpush.msra.mxu3 %v1369_v7  ;;  %v1609_v44 = vld [vmem:[#allocation7 + $0x294] ss:$0 sm:$0xff] }
 0xfa2   :  { %v1304_v4 = vadd.f32 %v1303_v63, %v1301_v61  ;;  %1466 = vmatpush.msra.mxu1 %v1451_v27 }
 0xfa3   :  { %v1293_v53 = vmul.f32 %v1672_v35, %v1292_v51  ;;  %1431 = vmatpush.msra.mxu3 %v1368_v10  ;;  %v1610_v51 = vld [vmem:[#allocation7 + $0x315] ss:$0 sm:$0xff] }
 0xfa4   :  { %1467 = vmatpush.msra.mxu1 %v1450_v28 }
 0xfa5   :  { %v1297_v57 = vsel %vm1296_vm6, %v1672_v35, %v1293_v53  ;;  %1432 = vmatpush.msra.mxu3 %v1367_v13  ;;  %v1344_v35 = vperm.slane %v1314_v29, 1 }
 0xfa6   :  { %v1299_v6 = vmul.f32 %v1297_v57, %v2137_v8  ;;  %v1388_v8 = vld [vmem:[#allocation7 + $0x244] sm:$0xff]  ;;  %1468 = vmatpush.msra.mxu1 %v1449_v54 }
 0xfa7   :  { %1407 = vmatpush.msrb.mxu0 %v1388_v8  ;;  %1433 = vmatpush.msra.mxu3 %v1366_v15 }
 0xfa8   :  { %v1302_v62 = vmul.f32 %v1300_v24, %v1299_v6  ;;  %1469 = vmatpush.msra.mxu1 %v1448_v31 }
 0xfa9   :  { %1408 = vmatpush.msrb.mxu0 %v1387_v12 }
 0xfaa   :  { %v1305_v3 = vadd.f32 %v1303_v63, %v1302_v62  ;;  %1470 = vmatpush.msra.mxu1 %v1447_v32 }
 0xfab   :  { %1409 = vmatpush.msrb.mxu0 %v1386_v14 }
 0xfac   :  { %v1318_v5 = vrot.slane %v1305_v3, 7  ;;  %1471 = vmatpush.msra.mxu1 %v1446_v39 }
 0xfad   :  { %1410 = vmatpush.msrb.mxu0 %v1385_v16 }
 0xfae   :  { %v1320_v9 = vsel %vm1319_vm7, %v1318_v5, %v1304_v4  ;;  %1472 = vmatpush.msra.mxu1 %v1445_v40 }
 0xfaf   :  { %1571 = vmatmul.msk.f32.vlgmr.msrb.gmra.mxu2 %vm164_vm1, %v1320_v9  ;;  %1411 = vmatpush.msrb.mxu0 %v1384_v17 }
 0xfb0   :  { %1473 = vmatpush.msra.mxu1 %v1444_v41 }
 0xfb1   :  { %1412 = vmatpush.msrb.mxu0 %v1383_v18 }
 0xfb2   :  { %1474 = vmatpush.msra.mxu1 %v1443_v42 }
 0xfb3   :  { %1413 = vmatpush.msrb.mxu0 %v1382_v20 }
 0xfb4   :  { %1475 = vmatpush.msra.mxu1 %v1442_v43 }
 0xfb7   :  { %1572 = vmatmul.msk.f32.vlgmr.msra.gmra.mxu2 %vm164_vm1, %v1320_v9  ;;  %vm1480_vm1 = vcmask 25600  }
0x1032   :  { %v1340_v33 = vpop.f32.mrf.mxu2 }
0x1033   :  { %v1341_v34 = vadd.f32 %v1340_v33, %v1315_v30 }
0x1035   :  { %v1343_v1 = vmax.f32 %v1341_v34, 0.0 }
0x1037   :  { %1434 = vmatmul.f32.vlgmr.msra.gmra.mxu3 %v1343_v1 }
0x103a   :  { %v1362_v36 = vpop.f32.mrf.mxu2 }
0x103b   :  { %v1363_v37 = vadd.f32 %v1362_v36, %v1344_v35 }
0x103d   :  { %v1365_v38 = vmax.f32 %v1363_v37, 0.0 }
0x103f   :  { %1414 = vmatmul.f32.vlgmr.msrb.gmra.mxu0 %v1365_v38 }
0x10ba   :  { %v1435_v45 = vpop.f32.mrf.mxu3 }
0x10bc   :  { %v1415_v46 = vpop.f32.mrf.mxu0 }
0x10bd   :  { %v1436_v47 = vadd.f32 %v1435_v45, %v1415_v46 }
0x10bf   :  { %v1440_v48 = vadd.f32 %v1609_v44, %v1436_v47 }
0x10c1   :  { %v1441_v50 = vmax.f32 %v1440_v48, 0.0 }
0x10c3   :  { %1476 = vmatmul.f32.vlgmr.msra.gmra.mxu1 %v1441_v50 }
0x1140   :  { %v1477_v19 = vpop.f32.mrf.mxu1 }
0x1141   :  { %v1478_v52 = vadd.f32 %v1610_v51, %v1477_v19 }
0x1143   :  { %1481 = vst.msk [vmem:[#allocation8] sm:$0x3] %vm1480_vm1, %v1478_v52 }
0x1144   :  { %1492 = dma.vmem_to_hbm [thread:$0]  %s1488_s25, 32, %s1490_s29, [#allocation5]  }
0x1145   :  { %1737 = dma.done.wait [#allocation5], 32  }
0x1146   :  { %1738 = vsyncadd [#allocation5], 4294967264 }
0x1147   :  { %1497 = vsyncpa [#allocation4], 1 }
0x1148   :  { %1498 = vsyncpa [#allocation5], 1 }
0x1149   :  { %1499 = vsyncpa [#allocation6], 1 }

</bundles_post_ra>
